<compile_context>
chip_gen: v7x
topology: tpu7x:2x2x1
jax: 0.10.0
libtpu: 0.0.40
codegen_flags: <defaults>
</compile_context>

<pallas_src>
import functools
import math

import jax
import jax.numpy as jnp
from jax import lax
from jax.experimental import pallas as pl
from jax.experimental.pallas import tpu as pltpu

BN_EPS = 1e-5

# ----------------------------------------------------------------------------
# Frozen ResNet-50 feature extractor (conv1 .. layer3), plain-JAX glue, NHWC.
# TODO(synk): the frozen/pretrained resnet50 backbone (conv1..layer3) is kept
# in plain JAX (lax.conv, NHWC/HWIO) rather than as hand-written Pallas conv
# kernels; the module-specific hot path (fc head) is the Pallas kernel below.
# ----------------------------------------------------------------------------

_LAYER_CFG = ((64, 3, 1), (128, 4, 2), (256, 6, 2))  # (planes, blocks, stride)


def _conv2d(x, w, stride, pad):
    return lax.conv_general_dilated(
        x, w, window_strides=(stride, stride),
        padding=[(pad, pad), (pad, pad)],
        dimension_numbers=("NHWC", "HWIO", "NHWC"))


def _batchnorm(x, bn):
    gamma, beta, mean, var = bn
    inv = gamma / jnp.sqrt(var + BN_EPS)
    return x * inv + (beta - mean * inv)      # broadcast over channel (last) axis


def _relu(x):
    return jnp.maximum(x, 0.0)


def _maxpool_3x3_s2(x):
    return lax.reduce_window(
        x, -jnp.inf, lax.max,
        window_dimensions=(1, 3, 3, 1), window_strides=(1, 2, 2, 1),
        padding=((0, 0), (1, 1), (1, 1), (0, 0)))


def _conv_init(key, out_c, in_c, kh, kw):
    fan_in = in_c * kh * kw
    return jax.random.normal(key, (kh, kw, in_c, out_c), jnp.float32) * math.sqrt(2.0 / fan_in)


def _bn_init(c):
    return (jnp.ones((c,), jnp.float32), jnp.zeros((c,), jnp.float32),
            jnp.zeros((c,), jnp.float32), jnp.ones((c,), jnp.float32))


def _bottleneck_init(key, in_c, planes, stride):
    k1, k2, k3, k4 = jax.random.split(key, 4)
    p = {
        "w1": _conv_init(k1, planes, in_c, 1, 1), "bn1": _bn_init(planes),
        "w2": _conv_init(k2, planes, planes, 3, 3), "bn2": _bn_init(planes),
        "w3": _conv_init(k3, planes * 4, planes, 1, 1), "bn3": _bn_init(planes * 4),
    }
    if stride != 1 or in_c != planes * 4:
        p["wd"] = _conv_init(k4, planes * 4, in_c, 1, 1)
        p["bnd"] = _bn_init(planes * 4)
    return p


def _bottleneck_apply(x, p, stride):
    out = _relu(_batchnorm(_conv2d(x, p["w1"], 1, 0), p["bn1"]))
    out = _relu(_batchnorm(_conv2d(out, p["w2"], stride, 1), p["bn2"]))
    out = _batchnorm(_conv2d(out, p["w3"], 1, 0), p["bn3"])
    if "wd" in p:
        sc = _batchnorm(_conv2d(x, p["wd"], stride, 0), p["bnd"])
    else:
        sc = x
    return _relu(out + sc)


def init_backbone(key):
    keys = jax.random.split(key, 4)
    params = {"conv1": _conv_init(keys[0], 64, 3, 7, 7), "bn1": _bn_init(64)}
    layers = []
    in_c = 64
    for li, (planes, blocks, stride) in enumerate(_LAYER_CFG):
        blks = []
        for b in range(blocks):
            p = _bottleneck_init(jax.random.fold_in(keys[li + 1], b),
                                 in_c, planes, stride if b == 0 else 1)
            blks.append(p)
            in_c = planes * 4
        layers.append(blks)
    params["layers"] = layers
    return params


def backbone_apply(params, x_nchw):
    # resnet50._modules iterated until 'layer4' -> conv1, bn1, relu, maxpool,
    # layer1, layer2, layer3.  Input is NCHW like PyTorch; transpose the cheap
    # 3-channel image once and stay NHWC from then on.
    x = jnp.transpose(x_nchw, (0, 2, 3, 1))
    x = _relu(_batchnorm(_conv2d(x, params["conv1"], 2, 3), params["bn1"]))
    x = _maxpool_3x3_s2(x)
    for li, (planes, blocks, stride) in enumerate(_LAYER_CFG):
        for b, p in enumerate(params["layers"][li]):
            x = _bottleneck_apply(x, p, stride if b == 0 else 1)
    # Emit bf16 directly so (under jit) the cast fuses into the last block's
    # elementwise epilogue instead of becoming a separate read+write of the
    # 1024-channel feature map in HBM inside the head wrapper.
    return x.astype(jnp.bfloat16)  # (B, H/16, W/16, 1024) NHWC


# ----------------------------------------------------------------------------
# Pallas kernel: the fc head
#   Conv2d(1024->512,1x1) -> ReLU -> Conv2d(512->128,1x1) -> ReLU ->
#   Conv2d(128->8,1x1)
# computed as a tiled per-pixel matmul chain on the MXU (bf16 in, f32 acc,
# bf16 out, 128-lane-dense output block).
# ----------------------------------------------------------------------------


def _fc_head_kernel(f_ref, w1_ref, b1_ref, w2_ref, b2_ref, w3_ref, b3_ref,
                    o_ref, *, bf16_relu):
    # f_ref: (TM, 1024) bf16; w* bf16; b* f32; o_ref: (TM, 128) bf16.
    # Rows are fully independent along the M axis: the boundary (partial) grid
    # block may carry garbage tail rows in VMEM, but they never mix into valid
    # rows and the partial output block only writes the valid rows back.
    x = f_ref[...]
    h1 = jnp.dot(x, w1_ref[...], preferred_element_type=jnp.float32) + b1_ref[...]
    if bf16_relu:                                   # v6e/v7x: bf16 VALU ReLU
        h1 = jnp.maximum(h1.astype(jnp.bfloat16), 0.0)
    else:                                           # v5e: no bf16 VPU -> f32 ReLU
        h1 = jnp.maximum(h1, 0.0).astype(jnp.bfloat16)
    h2 = jnp.dot(h1, w2_ref[...], preferred_element_type=jnp.float32) + b2_ref[...]
    if bf16_relu:
        h2 = jnp.maximum(h2.astype(jnp.bfloat16), 0.0)
    else:
        h2 = jnp.maximum(h2, 0.0).astype(jnp.bfloat16)
    y = jnp.dot(h2, w3_ref[...], preferred_element_type=jnp.float32) + b3_ref[...]
    o_ref[...] = y.astype(o_ref.dtype)


def init_fc(key):
    # NOTE: weights stored as (cin, cout).  Loading pretrained PyTorch Conv2d
    # 1x1 weights (cout, cin, 1, 1) would require w.reshape(cout, cin).T.
    k1, k2, k3, k4, k5, k6 = jax.random.split(key, 6)

    def lin(kw, kb, cin, cout):
        bound = 1.0 / math.sqrt(cin)
        w = jax.random.uniform(kw, (cin, cout), jnp.float32, -bound, bound)
        b = jax.random.uniform(kb, (1, cout), jnp.float32, -bound, bound)
        return w, b

    w1, b1 = lin(k1, k2, 1024, 512)
    w2, b2 = lin(k3, k4, 512, 128)
    w3, b3 = lin(k5, k6, 128, 8)
    return (w1, b1, w2, b2, w3, b3)


def _round_up(v, m):
    return -(-v // m) * m


def _tpu_config():
    """Generation-aware tuning knobs (trace-time query, safe fallbacks)."""
    kind = ""
    try:
        kind = (jax.devices()[0].device_kind or "")
    except Exception:
        pass
    k = kind.lower().replace(" ", "")
    is_v5e = ("v5lite" in k) or ("v5e" in k)
    is_v7 = ("v7" in k) or ("tpu7" in k)
    return {
        # v7x has 2 TensorCores sharing the "parallel" grid axis.
        "num_tc": 2 if is_v7 else 1,
        # v5e/v6e (128 MiB VMEM, 1 TC): bigger tiles amortize per-step overhead.
        "max_tile_m": 1024 if is_v7 else 2048,
        # v7x physical VMEM is 64 MiB -> keep headroom; 128 MiB parts get 64 MiB.
        "vmem_limit_bytes": (32 << 20) if is_v7 else (64 << 20),
        # v5e has no bf16 VPU; v6e/v7x do.
        "bf16_relu": not is_v5e,
    }


def _pick_tile_m(n, max_tile_m, num_tc):
    # bf16 feature block -> sublane quantum is 16 rows (not 8).
    n16 = _round_up(max(n, 16), 16)
    if num_tc <= 1:
        # Single TensorCore (v5e/v6e): one big tile; splitting small inputs
        # only adds ~0.35us/step and starves the MXU of M.
        return min(n16, max_tile_m)
    # Two TensorCores (v7x): aim for an even grid-step count (>= 2) so both
    # cores get whole steps of work.
    if n16 <= 2 * max_tile_m:
        steps = 2
    else:
        steps = pl.cdiv(n16, max_tile_m)
        if steps % 2:
            steps += 1
    return max(16, min(_round_up(pl.cdiv(n16, steps), 16), max_tile_m))


def fc_head_pallas(feats_nhwc, fc_params, cfg=None):
    # feats_nhwc: (B, h, w, 1024) channels-last bf16 -> free reshape to pixels x C.
    if cfg is None:
        cfg = _tpu_config()
    B, h, w, C = feats_nhwc.shape
    x = feats_nhwc.reshape(B * h * w, C)
    if x.dtype != jnp.bfloat16:
        x = x.astype(jnp.bfloat16)    # no-op on the normal path (backbone emits bf16)
    n = x.shape[0]

    tile_m = _pick_tile_m(n, cfg["max_tile_m"], cfg["num_tc"])
    grid_m = pl.cdiv(n, tile_m)       # no jnp.pad: Pallas handles the boundary block

    w1, b1, w2, b2, w3, b3 = fc_params
    c_out = w3.shape[1]               # 8
    c_out_pad = 128                   # lane-dense output (full 128-lane stores)

    w1b = w1.astype(jnp.bfloat16)
    w2b = w2.astype(jnp.bfloat16)
    w3p = (jnp.zeros((w3.shape[0], c_out_pad), jnp.float32)
           .at[:, :c_out].set(w3).astype(jnp.bfloat16))
    b3p = jnp.zeros((1, c_out_pad), jnp.float32).at[:, :c_out].set(b3)

    kernel = functools.partial(_fc_head_kernel, bf16_relu=cfg["bf16_relu"])

    out = pl.pallas_call(
        kernel,
        out_shape=jax.ShapeDtypeStruct((n, c_out_pad), jnp.bfloat16),
        grid_spec=pltpu.PrefetchScalarGridSpec(
            num_scalar_prefetch=0,
            grid=(grid_m,),
            in_specs=[
                pl.BlockSpec((tile_m, C), lambda i: (i, 0)),
                pl.BlockSpec((C, 512), lambda i: (0, 0)),
                pl.BlockSpec((1, 512), lambda i: (0, 0)),
                pl.BlockSpec((512, 128), lambda i: (0, 0)),
                pl.BlockSpec((1, 128), lambda i: (0, 0)),
                pl.BlockSpec((128, c_out_pad), lambda i: (0, 0)),
                pl.BlockSpec((1, c_out_pad), lambda i: (0, 0)),
            ],
            out_specs=pl.BlockSpec((tile_m, c_out_pad), lambda i: (i, 0)),
        ),
        compiler_params=pltpu.CompilerParams(
            dimension_semantics=("parallel",),
            vmem_limit_bytes=cfg["vmem_limit_bytes"]),
    )(x, w1b, b1, w2b, b2, w3p, b3p)

    # Tiny pass: only the 8 real channels are sliced out and widened to f32.
    out = out[:, :c_out].astype(jnp.float32).reshape(B, h, w, c_out)
    return out  # NHWC (B, h, w, 8)


# ----------------------------------------------------------------------------
# Full forward: resnet(conv1..layer3) -> fc head (Pallas) -> unsqueeze+repeat.
# ----------------------------------------------------------------------------


def resnet_duplicate_forward(backbone_params, fc_params, x):
    f = backbone_apply(backbone_params, x)          # (B, h, w, 1024) NHWC bf16
    y = fc_head_pallas(f, fc_params)                # (B, h, w, 8)    NHWC f32
    y = jnp.transpose(y, (0, 3, 1, 2))              # (B, 8, h, w)    NCHW (tiny)
    B, C, h, w = y.shape
    # x.unsqueeze(-1).repeat(1, 1, 1, 1, h) -> (B, 8, h, w, h)
    return jnp.broadcast_to(y[..., None], (B, C, h, w, h))


if __name__ == "__main__":
    key = jax.random.PRNGKey(0)
    k_x, k_bb, k_fc = jax.random.split(key, 3)

    # Small shapes consistent with the module: RGB input, spatial 64 -> layer3
    # features of shape (2, 4, 4, 1024) -> output (2, 8, 4, 4, 4).
    x = jax.random.normal(k_x, (2, 3, 64, 64), jnp.float32)

    backbone_params = init_backbone(k_bb)
    fc_params = init_fc(k_fc)

    fwd = jax.jit(resnet_duplicate_forward)
    out = fwd(backbone_params, fc_params, x)
    out = jax.block_until_ready(out)

    assert out.shape == (2, 8, 4, 4, 4), out.shape
    assert bool(jnp.all(jnp.isfinite(out)))

    # Lightweight correctness check of the Pallas head vs a plain-JAX f32 head
    # (loose tolerance: kernel uses bf16 MXU operands / bf16 output with f32
    # accumulation; both paths consume the same bf16-quantized features).
    feats = backbone_apply(backbone_params, x).astype(jnp.float32)   # (B, h, w, 1024)
    w1, b1, w2, b2, w3, b3 = fc_params
    r = feats.reshape(-1, feats.shape[-1])
    r = jnp.maximum(r @ w1 + b1, 0.0)
    r = jnp.maximum(r @ w2 + b2, 0.0)
    r = (r @ w3 + b3).reshape(feats.shape[0], feats.shape[1], feats.shape[2], -1)
    ref = jnp.transpose(r, (0, 3, 1, 2))                             # (B, 8, h, w)
    got = out[..., 0]
    rel_err = float(jnp.max(jnp.abs(got - ref)) / (jnp.max(jnp.abs(ref)) + 1e-6))
    assert rel_err < 5e-2, rel_err

    print("KERNEL_OK")
</pallas_src>

<mosaic_0001>
module attributes {stable_mosaic.version = 11 : i64} {
  func.func @_fc_head_kernel(%arg0: i32, %arg1: memref<32x1024xbf16, #tpu.memory_space<vmem>>, %arg2: memref<1024x512xbf16, #tpu.memory_space<vmem>>, %arg3: memref<1x512xf32, #tpu.memory_space<vmem>>, %arg4: memref<512x128xbf16, #tpu.memory_space<vmem>>, %arg5: memref<1x128xf32, #tpu.memory_space<vmem>>, %arg6: memref<128x128xbf16, #tpu.memory_space<vmem>>, %arg7: memref<1x128xf32, #tpu.memory_space<vmem>>, %arg8: memref<32x128xbf16, #tpu.memory_space<vmem>>) attributes {dimension_semantics = [#tpu.dimension_semantics<parallel>], iteration_bounds = array<i64: 1>, scalar_prefetch = 0 : i64, scratch_operands = 0 : i64, tpu.core_type = #tpu.core_type<tc>, window_params = [{transform_indices = @transform_0, window_bounds = array<i64: 32, 1024>}, {pipeline_mode = #tpu.pipeline_mode<synchronous>, transform_indices = @transform_1, window_bounds = array<i64: 1024, 512>}, {pipeline_mode = #tpu.pipeline_mode<synchronous>, transform_indices = @transform_2, window_bounds = array<i64: 1, 512>}, {pipeline_mode = #tpu.pipeline_mode<synchronous>, transform_indices = @transform_3, window_bounds = array<i64: 512, 128>}, {pipeline_mode = #tpu.pipeline_mode<synchronous>, transform_indices = @transform_4, window_bounds = array<i64: 1, 128>}, {pipeline_mode = #tpu.pipeline_mode<synchronous>, transform_indices = @transform_5, window_bounds = array<i64: 128, 128>}, {pipeline_mode = #tpu.pipeline_mode<synchronous>, transform_indices = @transform_6, window_bounds = array<i64: 1, 128>}, {transform_indices = @transform_7, window_bounds = array<i64: 32, 128>}]} {
    %c0 = arith.constant 0 : index
    %c0_0 = arith.constant 0 : index
    %0 = vector.load %arg1[%c0, %c0_0] : memref<32x1024xbf16, #tpu.memory_space<vmem>>, vector<32x1024xbf16>
    %c0_1 = arith.constant 0 : index
    %c0_2 = arith.constant 0 : index
    %1 = vector.load %arg2[%c0_1, %c0_2] : memref<1024x512xbf16, #tpu.memory_space<vmem>>, vector<1024x512xbf16>
    %cst = arith.constant dense<0.000000e+00> : vector<32x512xf32>
    %2 = tpu.matmul %0, %1, %cst {dimension_numbers = #tpu.dot_dimension_numbers<[1], [0], [0], [1], [0, 0, 1, 1], [], []>} : vector<32x1024xbf16>, vector<1024x512xbf16>, vector<32x512xf32> -> vector<32x512xf32>
    %c0_3 = arith.constant 0 : index
    %c0_4 = arith.constant 0 : index
    %3 = vector.load %arg3[%c0_3, %c0_4] : memref<1x512xf32, #tpu.memory_space<vmem>>, vector<1x512xf32>
    %4 = vector.broadcast %3 : vector<1x512xf32> to vector<32x512xf32>
    %5 = arith.addf %2, %4 : vector<32x512xf32>
    %6 = arith.truncf %5 : vector<32x512xf32> to vector<32x512xbf16>
    %cst_5 = arith.constant 0.000000e+00 : bf16
    %7 = vector.broadcast %cst_5 : bf16 to vector<32x512xbf16>
    %8 = arith.maximumf %6, %7 : vector<32x512xbf16>
    %c0_6 = arith.constant 0 : index
    %c0_7 = arith.constant 0 : index
    %9 = vector.load %arg4[%c0_6, %c0_7] : memref<512x128xbf16, #tpu.memory_space<vmem>>, vector<512x128xbf16>
    %cst_8 = arith.constant dense<0.000000e+00> : vector<32x128xf32>
    %10 = tpu.matmul %8, %9, %cst_8 {dimension_numbers = #tpu.dot_dimension_numbers<[1], [0], [0], [1], [0, 0, 1, 1], [], []>} : vector<32x512xbf16>, vector<512x128xbf16>, vector<32x128xf32> -> vector<32x128xf32>
    %c0_9 = arith.constant 0 : index
    %c0_10 = arith.constant 0 : index
    %11 = vector.load %arg5[%c0_9, %c0_10] : memref<1x128xf32, #tpu.memory_space<vmem>>, vector<1x128xf32>
    %12 = vector.broadcast %11 : vector<1x128xf32> to vector<32x128xf32>
    %13 = arith.addf %10, %12 : vector<32x128xf32>
    %14 = arith.truncf %13 : vector<32x128xf32> to vector<32x128xbf16>
    %cst_11 = arith.constant 0.000000e+00 : bf16
    %15 = vector.broadcast %cst_11 : bf16 to vector<32x128xbf16>
    %16 = arith.maximumf %14, %15 : vector<32x128xbf16>
    %c0_12 = arith.constant 0 : index
    %c0_13 = arith.constant 0 : index
    %17 = vector.load %arg6[%c0_12, %c0_13] : memref<128x128xbf16, #tpu.memory_space<vmem>>, vector<128x128xbf16>
    %cst_14 = arith.constant dense<0.000000e+00> : vector<32x128xf32>
    %18 = tpu.matmul %16, %17, %cst_14 {dimension_numbers = #tpu.dot_dimension_numbers<[1], [0], [0], [1], [0, 0, 1, 1], [], []>} : vector<32x128xbf16>, vector<128x128xbf16>, vector<32x128xf32> -> vector<32x128xf32>
    %c0_15 = arith.constant 0 : index
    %c0_16 = arith.constant 0 : index
    %19 = vector.load %arg7[%c0_15, %c0_16] : memref<1x128xf32, #tpu.memory_space<vmem>>, vector<1x128xf32>
    %20 = vector.broadcast %19 : vector<1x128xf32> to vector<32x128xf32>
    %21 = arith.addf %18, %20 : vector<32x128xf32>
    %22 = arith.truncf %21 : vector<32x128xf32> to vector<32x128xbf16>
    %c0_17 = arith.constant 0 : index
    %c0_18 = arith.constant 0 : index
    %23 = vector.load %arg8[%c0_17, %c0_18] : memref<32x128xbf16, #tpu.memory_space<vmem>>, vector<32x128xbf16>
    tpu.vector_store %arg8[%c0_17, %c0_18], %22 {strides = array<i32>} : memref<32x128xbf16, #tpu.memory_space<vmem>>, vector<32x128xbf16>,
    return
  }
  func.func @transform_0(%arg0: i32) -> (i32, i32) {
    %c0_i32 = arith.constant 0 : i32
    %c0_i32_0 = arith.constant 0 : i32
    return %arg0, %c0_i32 : i32, i32
  }
  func.func @transform_1(%arg0: i32) -> (i32, i32) {
    %c0_i32 = arith.constant 0 : i32
    %c0_i32_0 = arith.constant 0 : i32
    %c0_i32_1 = arith.constant 0 : i32
    return %c0_i32, %c0_i32_0 : i32, i32
  }
  func.func @transform_2(%arg0: i32) -> (i32, i32) {
    %c0_i32 = arith.constant 0 : i32
    %c0_i32_0 = arith.constant 0 : i32
    %c0_i32_1 = arith.constant 0 : i32
    return %c0_i32, %c0_i32_0 : i32, i32
  }
  func.func @transform_3(%arg0: i32) -> (i32, i32) {
    %c0_i32 = arith.constant 0 : i32
    %c0_i32_0 = arith.constant 0 : i32
    %c0_i32_1 = arith.constant 0 : i32
    return %c0_i32, %c0_i32_0 : i32, i32
  }
  func.func @transform_4(%arg0: i32) -> (i32, i32) {
    %c0_i32 = arith.constant 0 : i32
    %c0_i32_0 = arith.constant 0 : i32
    %c0_i32_1 = arith.constant 0 : i32
    return %c0_i32, %c0_i32_0 : i32, i32
  }
  func.func @transform_5(%arg0: i32) -> (i32, i32) {
    %c0_i32 = arith.constant 0 : i32
    %c0_i32_0 = arith.constant 0 : i32
    %c0_i32_1 = arith.constant 0 : i32
    return %c0_i32, %c0_i32_0 : i32, i32
  }
  func.func @transform_6(%arg0: i32) -> (i32, i32) {
    %c0_i32 = arith.constant 0 : i32
    %c0_i32_0 = arith.constant 0 : i32
    %c0_i32_1 = arith.constant 0 : i32
    return %c0_i32, %c0_i32_0 : i32, i32
  }
  func.func @transform_7(%arg0: i32) -> (i32, i32) {
    %c0_i32 = arith.constant 0 : i32
    %c0_i32_0 = arith.constant 0 : i32
    return %arg0, %c0_i32 : i32, i32
  }
}

</mosaic_0001>

<bundles_post_ra>
// kernel: resnet_duplicate_forward.1
= control target key start
LH: loop header
LB: loop body
LE: loop exit
PB: predicated region body
PF: predicated region fallthrough
CT: control target
= control target key end

     0   :  { %12 = vsyncpa [#allocation3], 0  ;;  %s4045_s0 = inlined_call_operand.hbm [shape: bf16[32,1024], index: 0, kind: input, shape index: {}]   ;;  %s4046_s1 = inlined_call_operand.hbm [shape: bf16[1024,512], index: 1, kind: input, shape index: {}]   ;;  %s4047_s2 = inlined_call_operand.hbm [shape: f32[1,512], index: 2, kind: input, shape index: {}]   ;;  %s4048_s3 = inlined_call_operand.hbm [shape: bf16[512,128], index: 3, kind: input, shape index: {}]   ;;  %s4049_s4 = inlined_call_operand.hbm [shape: f32[1,128], index: 4, kind: input, shape index: {}]   ;;  %s4050_s5 = inlined_call_operand.hbm [shape: bf16[128,128], index: 5, kind: input, shape index: {}]   ;;  %s4051_s6 = inlined_call_operand.hbm [shape: f32[1,128], index: 6, kind: input, shape index: {}]   ;;  %s4052_s7 = inlined_call_operand.hbm [shape: bf16[32,128], index: 7, kind: output, shape index: {}]  }
   0x1   :  { %13 = vsyncpa [#allocation6], 0 }
   0x2   :  { %14 = vsyncpa [#allocation9], 0 }
   0x3   :  { %15 = vsyncpa [#allocation12], 0 }
   0x4   :  { %16 = vsyncpa [#allocation4], 0  ;;  %s3844_s24 = smov [#allocation5]   ;;  %s3658_s28 = scalar_lea.hbm %s4046_s1, 32768 }
   0x5   :  { %s34_s25 = sshll.u32 %s3844_s24, 4  ;;  %p3659_p0 = scmp.ne.s32.totalorder %s4046_s1, %s3658_s28  ;;  %s35_s25 = int_to_ptr.vmem [resolvable:$true] %s34_s25 }
   0x6   :  { %p3662_p1 = scmp.lt.u32.totalorder %s3658_s28, %s4046_s1 }
   0x8   :  { %p3664_p2 = pnand %p3662_p1, %p3659_p0 }
   0xa   :  { %3667 = shalt.err (!%p3664_p2)
}
   0xb   :  { %s3668_s10 = scalar_lea.vmem %s35_s25, 32768  ;;  %p3673_p4 = scmp.lt.s32.totalorder %s35_s25, %s35_s25 }
   0xc   :  { %p3669_p3 = scmp.ne.s32.totalorder %s35_s25, %s3668_s10  ;;  %p3674_p5 = scmp.lt.s32.totalorder %s3668_s10, %s3668_s10 }
   0xe   :  { %p3675_p6 = por %p3674_p5, %p3673_p4 }
  0x10   :  { %p3676_p7 = pnand %p3675_p6, %p3669_p3 }
  0x12   :  { %3679 = shalt.err (!%p3676_p7)
}
  0x13   :  { %s3845_s11 = smov 256   ;;  %s3846_s12 = smov 16  }
  0x14   :  { %40 = dma.hbm_to_vmem [thread:$0]  %s4046_s1, 32768, %s35_s25, [#allocation6], %s3845_s11, %s3845_s11, %s3846_s12  }
  0x15   :  { %s3847_s15 = smov [#allocation8]   ;;  %s3680_s19 = scalar_lea.hbm %s4048_s3, 4096 }
  0x16   :  { %s56_s16 = sshll.u32 %s3847_s15, 4  ;;  %p3681_p8 = scmp.ne.s32.totalorder %s4048_s3, %s3680_s19  ;;  %s57_s16 = int_to_ptr.vmem [resolvable:$true] %s56_s16 }
  0x17   :  { %p3684_p9 = scmp.lt.u32.totalorder %s3680_s19, %s4048_s3 }
  0x19   :  { %p3686_p10 = pnand %p3684_p9, %p3681_p8 }
  0x1b   :  { %3689 = shalt.err (!%p3686_p10)
}
  0x1c   :  { %s3690_s24 = scalar_lea.vmem %s57_s16, 4096  ;;  %p3695_p12 = scmp.lt.s32.totalorder %s57_s16, %s57_s16 }
  0x1d   :  { %p3691_p11 = scmp.ne.s32.totalorder %s57_s16, %s3690_s24  ;;  %p3696_p13 = scmp.lt.s32.totalorder %s3690_s24, %s3690_s24 }
  0x1f   :  { %p3697_p0 = por %p3696_p13, %p3695_p12 }
  0x21   :  { %p3698_p1 = pnand %p3697_p0, %p3691_p11 }
  0x23   :  { %3701 = shalt.err (!%p3698_p1)
}
  0x24   :  { %s3848_s1 = smov 64   ;;  %s3849_s25 = smov 4  }
  0x25   :  { %62 = dma.hbm_to_vmem [thread:$0]  %s4048_s3, 4096, %s57_s16, [#allocation9], %s3848_s1, %s3848_s1, %s3849_s25  }
  0x26   :  { %s3850_s28 = smov [#allocation11]   ;;  %s3851_s30 = smov [#allocation2]  }
  0x27   :  { %s78_s29 = sshll.u32 %s3850_s28, 4  ;;  %s22_s8 = sshll.u32 %s3851_s30, 4  ;;  %s79_s29 = int_to_ptr.vmem [resolvable:$true] %s78_s29  ;;  %s3926_s8 = int_to_ptr.vmem [resolvable:$true] %s22_s8 }
  0x28   :  { %s3702_s11 = scalar_lea.hbm %s4050_s5, 1024 }
  0x29   :  { %p3703_p2 = scmp.ne.s32.totalorder %s4050_s5, %s3702_s11  ;;  %p3706_p3 = scmp.lt.u32.totalorder %s3702_s11, %s4050_s5 }
  0x2b   :  { %p3708_p4 = pnand %p3706_p3, %p3703_p2 }
  0x2d   :  { %3711 = shalt.err (!%p3708_p4)
}
  0x2e   :  { %s3712_s3 = scalar_lea.vmem %s79_s29, 1024  ;;  %p3717_p6 = scmp.lt.s32.totalorder %s79_s29, %s79_s29 }
  0x2f   :  { %p3713_p5 = scmp.ne.s32.totalorder %s79_s29, %s3712_s3  ;;  %p3718_p7 = scmp.lt.s32.totalorder %s3712_s3, %s3712_s3 }
  0x31   :  { %p3719_p8 = por %p3718_p7, %p3717_p6 }
  0x33   :  { %p3720_p9 = pnand %p3719_p8, %p3713_p5 }
  0x35   :  { %3723 = shalt.err (!%p3720_p9)
}
  0x36   :  { %84 = dma.hbm_to_vmem [thread:$0]  %s4050_s5, 1024, %s79_s29, [#allocation12], %s3848_s1, %s3848_s1, %s3849_s25  }
  0x37   :  { %s3724_s20 = scalar_lea.hbm %s4045_s0, 2048 }
  0x38   :  { %p3725_p10 = scmp.ne.s32.totalorder %s4045_s0, %s3724_s20  ;;  %p3728_p11 = scmp.lt.u32.totalorder %s3724_s20, %s4045_s0 }
  0x3a   :  { %p3730_p12 = pnand %p3728_p11, %p3725_p10 }
  0x3c   :  { %3733 = shalt.err (!%p3730_p12)
}
  0x3d   :  { %s3734_s26 = scalar_lea.vmem %s3926_s8, 2048  ;;  %p3739_p0 = scmp.lt.s32.totalorder %s3926_s8, %s3926_s8 }
  0x3e   :  { %p3735_p13 = scmp.ne.s32.totalorder %s3926_s8, %s3734_s26  ;;  %p3740_p1 = scmp.lt.s32.totalorder %s3734_s26, %s3734_s26 }
  0x40   :  { %p3741_p2 = por %p3740_p1, %p3739_p0 }
  0x42   :  { %p3742_p3 = pnand %p3741_p2, %p3735_p13 }
  0x44   :  { %3745 = shalt.err (!%p3742_p3)
}
  0x45   :  { %s3852_s5 = smov 512   ;;  %s3853_s27 = smov 32  }
  0x46   :  { %28 = dma.hbm_to_vmem [thread:$0]  %s4045_s0, 2048, %s3926_s8, [#allocation3], %s3852_s5, %s3852_s5, %s3853_s27  }
  0x47   :  { %s3854_s30 = smov [#allocation7]   ;;  %s3855_s10 = smov [#allocation10]  }
  0x48   :  { %s47_s9 = sshll.u32 %s3854_s30, 4  ;;  %s69_s11 = sshll.u32 %s3855_s10, 4  ;;  %s48_s9 = int_to_ptr.vmem [resolvable:$true] %s47_s9  ;;  %s70_s11 = int_to_ptr.vmem [resolvable:$true] %s69_s11 }
  0x49   :  { %s3746_s14 = scalar_lea.hbm %s4047_s2, 64 }
  0x4a   :  { %p3747_p4 = scmp.ne.s32.totalorder %s4047_s2, %s3746_s14  ;;  %p3750_p5 = scmp.lt.u32.totalorder %s3746_s14, %s4047_s2 }
  0x4c   :  { %p3752_p6 = pnand %p3750_p5, %p3747_p4 }
  0x4e   :  { %3755 = shalt.err (!%p3752_p6)
}
  0x4f   :  { %s3756_s0 = scalar_lea.vmem %s48_s9, 64  ;;  %p3761_p8 = scmp.lt.s32.totalorder %s48_s9, %s48_s9 }
  0x50   :  { %p3757_p7 = scmp.ne.s32.totalorder %s48_s9, %s3756_s0  ;;  %p3762_p9 = scmp.lt.s32.totalorder %s3756_s0, %s3756_s0 }
  0x52   :  { %p3763_p10 = por %p3762_p9, %p3761_p8 }
  0x54   :  { %p3764_p11 = pnand %p3763_p10, %p3757_p7 }
  0x56   :  { %3767 = shalt.err (!%p3764_p11)
}
  0x57   :  { %50 = dma.hbm_to_vmem [thread:$0]  %s4047_s2, 64, %s48_s9, [#allocation6]  }
  0x58   :  { %s3768_s21 = scalar_lea.hbm %s4049_s4, 16 }
  0x59   :  { %p3769_p12 = scmp.ne.s32.totalorder %s4049_s4, %s3768_s21  ;;  %p3772_p13 = scmp.lt.u32.totalorder %s3768_s21, %s4049_s4 }
  0x5b   :  { %p3774_p0 = pnand %p3772_p13, %p3769_p12 }
  0x5d   :  { %3777 = shalt.err (!%p3774_p0)
}
  0x5e   :  { %s3778_s5 = scalar_lea.vmem %s70_s11, 16  ;;  %s3782_s27 = scalar_lea.vmem %s70_s11, 32 }
  0x5f   :  { %p3779_p1 = scmp.ne.s32.totalorder %s70_s11, %s3778_s5  ;;  %p3783_p2 = scmp.lt.s32.totalorder %s70_s11, %s70_s11 }
  0x60   :  { %p3784_p3 = scmp.lt.s32.totalorder %s3782_s27, %s3778_s5 }
  0x62   :  { %p3785_p4 = por %p3784_p3, %p3783_p2 }
  0x64   :  { %p3786_p5 = pnand %p3785_p4, %p3779_p1 }
  0x66   :  { %3789 = shalt.err (!%p3786_p5)
}
  0x67   :  { %72 = dma.hbm_to_vmem [thread:$0]  %s4049_s4, 16, %s70_s11, [#allocation9]  }
  0x68   :  { %s3856_s29 = smov [#allocation13]   ;;  %s3790_s12 = scalar_lea.hbm %s4051_s6, 16 }
  0x69   :  { %s91_s30 = sshll.u32 %s3856_s29, 4  ;;  %p3791_p6 = scmp.ne.s32.totalorder %s4051_s6, %s3790_s12  ;;  %s92_s30 = int_to_ptr.vmem [resolvable:$true] %s91_s30 }
  0x6a   :  { %p3794_p7 = scmp.lt.u32.totalorder %s3790_s12, %s4051_s6 }
  0x6c   :  { %p3796_p8 = pnand %p3794_p7, %p3791_p6 }
  0x6e   :  { %3799 = shalt.err (!%p3796_p8)
}
  0x6f   :  { %s3800_s16 = scalar_lea.vmem %s92_s30, 16  ;;  %s3804_s4 = scalar_lea.vmem %s92_s30, 32 }
  0x70   :  { %p3801_p9 = scmp.ne.s32.totalorder %s92_s30, %s3800_s16  ;;  %p3805_p10 = scmp.lt.s32.totalorder %s92_s30, %s92_s30 }
  0x71   :  { %p3806_p11 = scmp.lt.s32.totalorder %s3804_s4, %s3800_s16 }
  0x73   :  { %p3807_p12 = por %p3806_p11, %p3805_p10 }
  0x75   :  { %p3808_p13 = pnand %p3807_p12, %p3801_p9 }
  0x77   :  { %3811 = shalt.err (!%p3808_p13)
}
  0x78   :  { %94 = dma.hbm_to_vmem [thread:$0]  %s4051_s6, 16, %s92_s30, [#allocation12]  }
  0x79   :  { %3834 = dma.done.wait [#allocation3], 2048  }
  0x7a   :  { %3835 = vsyncadd [#allocation3], 4294965248 }
  0x7b   :  { %3836 = dma.done.wait [#allocation6], 32832  }
  0x7c   :  { %3837 = vsyncadd [#allocation6], 4294934464 }
  0x7d   :  { %3838 = dma.done.wait [#allocation9], 4112  }
  0x7e   :  { %3839 = vsyncadd [#allocation9], 4294963184 }
  0x7f   :  { %3840 = dma.done.wait [#allocation12], 1040  }
  0x80   :  { %3841 = vsyncadd [#allocation12], 4294966256  ;;  %v3234_v0 = vld [vmem:[#allocation5 + $0x4] ss:$16 sps:$4 sm:$0xff]   ;;  %v3236_v1 = vld [vmem:[#allocation5 + $0xc] ss:$16 sps:$4 sm:$0xff]  }
  0x81   :  { %1771 = vmatprep.subr.bf16.mxu0 %v3234_v0  ;;  %v3238_v2 = vld [vmem:[#allocation5] ss:$16 sps:$4 sm:$0xff]   ;;  %v3239_v3 = vld [vmem:[#allocation5 + $0x8] ss:$16 sps:$4 sm:$0xff]   ;;  %1983 = vmatprep.subr.bf16.mxu1 %v3236_v1  ;;  %v3240_v4 = vld [vmem:[#allocation5 + $0x24] ss:$16 sps:$4 sm:$0xff]  }
  0x82   :  { %1772 = vmatpush1.bf16.msra.mxu0 %v3238_v2  ;;  %1984 = vmatpush1.bf16.msra.mxu1 %v3239_v3  ;;  %v3242_v5 = vld [vmem:[#allocation5 + $0x2c] ss:$16 sps:$4 sm:$0xff]   ;;  %v3244_v6 = vld [vmem:[#allocation5 + $0x20] ss:$16 sps:$4 sm:$0xff]   ;;  %v3245_v7 = vld [vmem:[#allocation5 + $0x28] ss:$16 sps:$4 sm:$0xff]  }
  0x83   :  { %1773 = vmatprep.subr.bf16.mxu0 %v3240_v4  ;;  %1985 = vmatprep.subr.bf16.mxu1 %v3242_v5  ;;  %v3246_v8 = vld [vmem:[#allocation5 + $0x44] ss:$16 sps:$4 sm:$0xff]   ;;  %v3248_v9 = vld [vmem:[#allocation5 + $0x4c] ss:$16 sps:$4 sm:$0xff]   ;;  %v3250_v10 = vld [vmem:[#allocation5 + $0x40] ss:$16 sps:$4 sm:$0xff]  }
  0x84   :  { %v3251_v11 = vld [vmem:[#allocation5 + $0x48] ss:$16 sps:$4 sm:$0xff]   ;;  %v3252_v12 = vld [vmem:[#allocation5 + $0x64] ss:$16 sps:$4 sm:$0xff]   ;;  %v3254_v13 = vld [vmem:[#allocation5 + $0x6c] ss:$16 sps:$4 sm:$0xff]  }
  0x85   :  { %v3256_v14 = vld [vmem:[#allocation5 + $0x60] ss:$16 sps:$4 sm:$0xff]   ;;  %v3257_v15 = vld [vmem:[#allocation5 + $0x68] ss:$16 sps:$4 sm:$0xff]   ;;  %v3258_v16 = vld [vmem:[#allocation5 + $0x84] ss:$16 sps:$4 sm:$0xff]  }
  0x86   :  { %1774 = vmatpush1.bf16.msra.mxu0 %v3244_v6  ;;  %1986 = vmatpush1.bf16.msra.mxu1 %v3245_v7  ;;  %v3260_v17 = vld [vmem:[#allocation5 + $0x8c] ss:$16 sps:$4 sm:$0xff]   ;;  %v3262_v18 = vld [vmem:[#allocation5 + $0x80] ss:$16 sps:$4 sm:$0xff]   ;;  %v3263_v19 = vld [vmem:[#allocation5 + $0x88] ss:$16 sps:$4 sm:$0xff]  }
  0x87   :  { %1775 = vmatprep.subr.bf16.mxu0 %v3246_v8  ;;  %1987 = vmatprep.subr.bf16.mxu1 %v3248_v9  ;;  %v3264_v20 = vld [vmem:[#allocation5 + $0xa4] ss:$16 sps:$4 sm:$0xff]   ;;  %v3266_v21 = vld [vmem:[#allocation5 + $0xac] ss:$16 sps:$4 sm:$0xff]   ;;  %v3268_v22 = vld [vmem:[#allocation5 + $0xa0] ss:$16 sps:$4 sm:$0xff]  }
  0x88   :  { %v3269_v23 = vld [vmem:[#allocation5 + $0xa8] ss:$16 sps:$4 sm:$0xff]   ;;  %v3270_v24 = vld [vmem:[#allocation5 + $0xc4] ss:$16 sps:$4 sm:$0xff]   ;;  %v3272_v25 = vld [vmem:[#allocation5 + $0xcc] ss:$16 sps:$4 sm:$0xff]  }
  0x89   :  { %v3274_v26 = vld [vmem:[#allocation5 + $0xc0] ss:$16 sps:$4 sm:$0xff]   ;;  %v3275_v27 = vld [vmem:[#allocation5 + $0xc8] ss:$16 sps:$4 sm:$0xff]   ;;  %v3276_v28 = vld [vmem:[#allocation5 + $0xe4] ss:$16 sps:$4 sm:$0xff]  }
  0x8a   :  { %1776 = vmatpush1.bf16.msra.mxu0 %v3250_v10  ;;  %1988 = vmatpush1.bf16.msra.mxu1 %v3251_v11  ;;  %v3278_v29 = vld [vmem:[#allocation5 + $0xec] ss:$16 sps:$4 sm:$0xff]   ;;  %v3280_v30 = vld [vmem:[#allocation5 + $0xe0] ss:$16 sps:$4 sm:$0xff]   ;;  %v3281_v31 = vld [vmem:[#allocation5 + $0xe8] ss:$16 sps:$4 sm:$0xff]  }
  0x8b   :  { %1777 = vmatprep.subr.bf16.mxu0 %v3252_v12  ;;  %1989 = vmatprep.subr.bf16.mxu1 %v3254_v13  ;;  %v3282_v32 = vld [vmem:[#allocation5 + $0x104] ss:$16 sps:$4 sm:$0xff]   ;;  %v3284_v33 = vld [vmem:[#allocation5 + $0x10c] ss:$16 sps:$4 sm:$0xff]   ;;  %v3286_v34 = vld [vmem:[#allocation5 + $0x100] ss:$16 sps:$4 sm:$0xff]  }
  0x8c   :  { %v3287_v35 = vld [vmem:[#allocation5 + $0x108] ss:$16 sps:$4 sm:$0xff]   ;;  %v3288_v36 = vld [vmem:[#allocation5 + $0x124] ss:$16 sps:$4 sm:$0xff]   ;;  %v3290_v37 = vld [vmem:[#allocation5 + $0x12c] ss:$16 sps:$4 sm:$0xff]  }
  0x8d   :  { %v3292_v38 = vld [vmem:[#allocation5 + $0x120] ss:$16 sps:$4 sm:$0xff]   ;;  %v3293_v39 = vld [vmem:[#allocation5 + $0x128] ss:$16 sps:$4 sm:$0xff]   ;;  %v3294_v40 = vld [vmem:[#allocation5 + $0x144] ss:$16 sps:$4 sm:$0xff]  }
  0x8e   :  { %1778 = vmatpush1.bf16.msra.mxu0 %v3256_v14  ;;  %1990 = vmatpush1.bf16.msra.mxu1 %v3257_v15  ;;  %v3296_v41 = vld [vmem:[#allocation5 + $0x14c] ss:$16 sps:$4 sm:$0xff]   ;;  %v3298_v42 = vld [vmem:[#allocation5 + $0x140] ss:$16 sps:$4 sm:$0xff]   ;;  %v3299_v43 = vld [vmem:[#allocation5 + $0x148] ss:$16 sps:$4 sm:$0xff]  }
  0x8f   :  { %1779 = vmatprep.subr.bf16.mxu0 %v3258_v16  ;;  %1991 = vmatprep.subr.bf16.mxu1 %v3260_v17  ;;  %v3300_v44 = vld [vmem:[#allocation5 + $0x164] ss:$16 sps:$4 sm:$0xff]   ;;  %v3302_v45 = vld [vmem:[#allocation5 + $0x16c] ss:$16 sps:$4 sm:$0xff]   ;;  %v3304_v48 = vld [vmem:[#allocation5 + $0x160] ss:$16 sps:$4 sm:$0xff]  }
  0x90   :  { %v117_v46 = vld [vmem:[#allocation2] sm:$0xff]  ;;  %v3305_v49 = vld [vmem:[#allocation5 + $0x168] ss:$16 sps:$4 sm:$0xff]   ;;  %v3308_v52 = vld [vmem:[#allocation5 + $0x18c] ss:$16 sps:$4 sm:$0xff]   ;;  %s3858_s6 = smov [#allocation14]  }
  0x91   :  { %v121_v47 = vld [vmem:[#allocation2 + $0x20] sm:$0xff]  ;;  %v3311_v54 = vld [vmem:[#allocation5 + $0x188] ss:$16 sps:$4 sm:$0xff]   ;;  %v3314_v56 = vld [vmem:[#allocation5 + $0x1ac] ss:$16 sps:$4 sm:$0xff]   ;;  %s2721_s0 = sshll.u32 %s3858_s6, 4  ;;  %s2722_s0 = int_to_ptr.vmem [resolvable:$true] %s2721_s0 }
  0x92   :  { %1780 = vmatpush1.bf16.msra.mxu0 %v3262_v18  ;;  %1992 = vmatpush1.bf16.msra.mxu1 %v3263_v19  ;;  %v2737_v50 = vcombine.high %v117_v46, %v121_v47  ;;  %v3306_v51 = vld [vmem:[#allocation5 + $0x184] ss:$16 sps:$4 sm:$0xff]   ;;  %v3310_v53 = vld [vmem:[#allocation5 + $0x180] ss:$16 sps:$4 sm:$0xff]   ;;  %v3317_v58 = vld [vmem:[#allocation5 + $0x1a8] ss:$16 sps:$4 sm:$0xff]   ;;  %v2736_v5 = vcombine.low %v117_v46, %v121_v47  ;;  %p3817_p1 = scmp.lt.s32.totalorder %s2722_s0, %s2722_s0 }
  0x93   :  { %1781 = vmatprep.subr.bf16.mxu0 %v3264_v20  ;;  %1993 = vmatprep.subr.bf16.mxu1 %v3266_v21  ;;  %v3312_v55 = vld [vmem:[#allocation5 + $0x1a4] ss:$16 sps:$4 sm:$0xff]   ;;  %v3316_v57 = vld [vmem:[#allocation5 + $0x1a0] ss:$16 sps:$4 sm:$0xff]   ;;  %v3320_v60 = vld [vmem:[#allocation5 + $0x1cc] ss:$16 sps:$4 sm:$0xff]  }
  0x94   :  { %1803 = vmatprep.mubr.bf16.mxu0 %v2737_v50  ;;  %2015 = vmatprep.mubr.bf16.mxu1 %v2737_v50  ;;  %v3318_v59 = vld [vmem:[#allocation5 + $0x1c4] ss:$16 sps:$4 sm:$0xff]   ;;  %v3322_v61 = vld [vmem:[#allocation5 + $0x1c0] ss:$16 sps:$4 sm:$0xff]   ;;  %v3323_v62 = vld [vmem:[#allocation5 + $0x1c8] ss:$16 sps:$4 sm:$0xff]  }
  0x95   :  { %v3324_v63 = vld [vmem:[#allocation5 + $0x1e4] ss:$16 sps:$4 sm:$0xff]   ;;  %v3326_v0 = vld [vmem:[#allocation5 + $0x1ec] ss:$16 sps:$4 sm:$0xff]   ;;  %v3328_v1 = vld [vmem:[#allocation5 + $0x1e0] ss:$16 sps:$4 sm:$0xff]  }
  0x96   :  { %1782 = vmatpush1.bf16.msra.mxu0 %v3268_v22  ;;  %1994 = vmatpush1.bf16.msra.mxu1 %v3269_v23  ;;  %v3329_v2 = vld [vmem:[#allocation5 + $0x1e8] ss:$16 sps:$4 sm:$0xff]   ;;  %v3332_v3 = vld [vmem:[#allocation5 + $0x204] ss:$16 sps:$4 sm:$0xff]   ;;  %v3335_v4 = vld [vmem:[#allocation5 + $0x20c] ss:$16 sps:$4 sm:$0xff]  }
  0x97   :  { %1783 = vmatprep.subr.bf16.mxu0 %v3270_v24  ;;  %1995 = vmatprep.subr.bf16.mxu1 %v3272_v25  ;;  %v3330_v6 = vld [vmem:[#allocation5 + $0x200] ss:$16 sps:$4 sm:$0xff]   ;;  %v3333_v7 = vld [vmem:[#allocation5 + $0x208] ss:$16 sps:$4 sm:$0xff]   ;;  %v3338_v8 = vld [vmem:[#allocation5 + $0x224] ss:$16 sps:$4 sm:$0xff]  }
  0x98   :  { %v3341_v9 = vld [vmem:[#allocation5 + $0x22c] ss:$16 sps:$4 sm:$0xff]   ;;  %v3336_v10 = vld [vmem:[#allocation5 + $0x220] ss:$16 sps:$4 sm:$0xff]   ;;  %v3339_v11 = vld [vmem:[#allocation5 + $0x228] ss:$16 sps:$4 sm:$0xff]  }
  0x99   :  { %v3344_v12 = vld [vmem:[#allocation5 + $0x244] ss:$16 sps:$4 sm:$0xff]   ;;  %v3347_v13 = vld [vmem:[#allocation5 + $0x24c] ss:$16 sps:$4 sm:$0xff]   ;;  %v3342_v14 = vld [vmem:[#allocation5 + $0x240] ss:$16 sps:$4 sm:$0xff]  }
  0x9a   :  { %1784 = vmatpush1.bf16.msra.mxu0 %v3274_v26  ;;  %1996 = vmatpush1.bf16.msra.mxu1 %v3275_v27  ;;  %v3345_v15 = vld [vmem:[#allocation5 + $0x248] ss:$16 sps:$4 sm:$0xff]   ;;  %v3350_v16 = vld [vmem:[#allocation5 + $0x264] ss:$16 sps:$4 sm:$0xff]   ;;  %v3353_v17 = vld [vmem:[#allocation5 + $0x26c] ss:$16 sps:$4 sm:$0xff]  }
  0x9b   :  { %1785 = vmatprep.subr.bf16.mxu0 %v3276_v28  ;;  %1997 = vmatprep.subr.bf16.mxu1 %v3278_v29  ;;  %v3348_v18 = vld [vmem:[#allocation5 + $0x260] ss:$16 sps:$4 sm:$0xff]   ;;  %v3351_v19 = vld [vmem:[#allocation5 + $0x268] ss:$16 sps:$4 sm:$0xff]   ;;  %v3356_v20 = vld [vmem:[#allocation5 + $0x284] ss:$16 sps:$4 sm:$0xff]  }
  0x9c   :  { %v3359_v21 = vld [vmem:[#allocation5 + $0x28c] ss:$16 sps:$4 sm:$0xff]   ;;  %v3354_v22 = vld [vmem:[#allocation5 + $0x280] ss:$16 sps:$4 sm:$0xff]   ;;  %v3357_v23 = vld [vmem:[#allocation5 + $0x288] ss:$16 sps:$4 sm:$0xff]  }
  0x9d   :  { %v3362_v24 = vld [vmem:[#allocation5 + $0x2a4] ss:$16 sps:$4 sm:$0xff]   ;;  %v3365_v25 = vld [vmem:[#allocation5 + $0x2ac] ss:$16 sps:$4 sm:$0xff]   ;;  %v3360_v29 = vld [vmem:[#allocation5 + $0x2a0] ss:$16 sps:$4 sm:$0xff]  }
  0x9e   :  { %1786 = vmatpush1.bf16.msra.mxu0 %v3280_v30  ;;  %1998 = vmatpush1.bf16.msra.mxu1 %v3281_v31  ;;  %v125_v26 = vld [vmem:[#allocation2 + $0x40] sm:$0xff]  ;;  %v3363_v30 = vld [vmem:[#allocation5 + $0x2a8] ss:$16 sps:$4 sm:$0xff]   ;;  %s3812_s8 = scalar_lea.vmem %s2722_s0, 256 }
  0x9f   :  { %1787 = vmatprep.subr.bf16.mxu0 %v3282_v32  ;;  %1999 = vmatprep.subr.bf16.mxu1 %v3284_v33  ;;  %v129_v27 = vld [vmem:[#allocation2 + $0x60] sm:$0xff]  ;;  %v3371_v33 = vld [vmem:[#allocation5 + $0x2cc] ss:$16 sps:$4 sm:$0xff]   ;;  %v3381_v46 = vld [vmem:[#allocation5 + $0x308] ss:$16 sps:$4 sm:$0xff]   ;;  %p3813_p0 = scmp.ne.s32.totalorder %s2722_s0, %s3812_s8  ;;  %p3818_p2 = scmp.lt.s32.totalorder %s3812_s8, %s3812_s8 }
  0xa0   :  { %v2745_v28 = vcombine.high %v125_v26, %v129_v27  ;;  %v2744_v31 = vcombine.low %v125_v26, %v129_v27  ;;  %v3368_v32 = vld [vmem:[#allocation5 + $0x2c4] ss:$16 sps:$4 sm:$0xff]   ;;  %v3387_v50 = vld [vmem:[#allocation5 + $0x328] ss:$16 sps:$4 sm:$0xff]  }
  0xa1   :  { %v3386_v47 = vld [vmem:[#allocation5 + $0x324] ss:$16 sps:$4 sm:$0xff]   ;;  %p3819_p3 = por %p3818_p2, %p3817_p1 }
  0xa2   :  { %1788 = vmatpush1.bf16.msra.mxu0 %v3286_v34  ;;  %2000 = vmatpush1.bf16.msra.mxu1 %v3287_v35  ;;  %v3996_v34 = vld [vmem:[#allocation2 + $0x8] sm:$0xff]  ;;  %v4006_v27 = vld [vmem:[#allocation2 + $0x30] sm:$0xff] }
  0xa3   :  { %1789 = vmatprep.subr.bf16.mxu0 %v3288_v36  ;;  %2001 = vmatprep.subr.bf16.mxu1 %v3290_v37  ;;  %v3998_v35 = vld [vmem:[#allocation2 + $0x28] sm:$0xff]  ;;  %v3366_v36 = vld [vmem:[#allocation5 + $0x2c0] ss:$16 sps:$4 sm:$0xff]   ;;  %p3820_p4 = pnand %p3819_p3, %p3813_p0 }
  0xa4   :  { %v3369_v37 = vld [vmem:[#allocation5 + $0x2c8] ss:$16 sps:$4 sm:$0xff]  }
  0xa6   :  { %1790 = vmatpush1.bf16.msra.mxu0 %v3292_v38  ;;  %2002 = vmatpush1.bf16.msra.mxu1 %v3293_v39  ;;  %v2739_v38 = vcombine.high %v3996_v34, %v3998_v35  ;;  %v3374_v39 = vld [vmem:[#allocation5 + $0x2e4] ss:$16 sps:$4 sm:$0xff]  }
  0xa7   :  { %1791 = vmatprep.subr.bf16.mxu0 %v3294_v40  ;;  %2003 = vmatprep.subr.bf16.mxu1 %v3296_v41  ;;  %v3377_v40 = vld [vmem:[#allocation5 + $0x2ec] ss:$16 sps:$4 sm:$0xff]   ;;  %v3372_v41 = vld [vmem:[#allocation5 + $0x2e0] ss:$16 sps:$4 sm:$0xff]  }
  0xaa   :  { %1792 = vmatpush1.bf16.msra.mxu0 %v3298_v42  ;;  %2004 = vmatpush1.bf16.msra.mxu1 %v3299_v43  ;;  %v3375_v42 = vld [vmem:[#allocation5 + $0x2e8] ss:$16 sps:$4 sm:$0xff]   ;;  %v3380_v43 = vld [vmem:[#allocation5 + $0x304] ss:$16 sps:$4 sm:$0xff]  }
  0xab   :  { %1793 = vmatprep.subr.bf16.mxu0 %v3300_v44  ;;  %2005 = vmatprep.subr.bf16.mxu1 %v3302_v45  ;;  %v3383_v44 = vld [vmem:[#allocation5 + $0x30c] ss:$16 sps:$4 sm:$0xff]   ;;  %v3378_v45 = vld [vmem:[#allocation5 + $0x300] ss:$16 sps:$4 sm:$0xff]  }
  0xae   :  { %1794 = vmatpush1.bf16.msra.mxu0 %v3304_v48  ;;  %2006 = vmatpush1.bf16.msra.mxu1 %v3305_v49  ;;  %v3389_v48 = vld [vmem:[#allocation5 + $0x32c] ss:$16 sps:$4 sm:$0xff]   ;;  %v3384_v49 = vld [vmem:[#allocation5 + $0x320] ss:$16 sps:$4 sm:$0xff]  }
  0xaf   :  { %1795 = vmatprep.subr.bf16.mxu0 %v3306_v51  ;;  %2007 = vmatprep.subr.bf16.mxu1 %v3308_v52  ;;  %v3392_v51 = vld [vmem:[#allocation5 + $0x344] ss:$16 sps:$4 sm:$0xff]   ;;  %v3395_v52 = vld [vmem:[#allocation5 + $0x34c] ss:$16 sps:$4 sm:$0xff]  }
  0xb2   :  { %1796 = vmatpush1.bf16.msra.mxu0 %v3310_v53  ;;  %2008 = vmatpush1.bf16.msra.mxu1 %v3311_v54  ;;  %v3390_v53 = vld [vmem:[#allocation5 + $0x340] ss:$16 sps:$4 sm:$0xff]   ;;  %v3393_v54 = vld [vmem:[#allocation5 + $0x348] ss:$16 sps:$4 sm:$0xff]  }
  0xb3   :  { %1797 = vmatprep.subr.bf16.mxu0 %v3312_v55  ;;  %2009 = vmatprep.subr.bf16.mxu1 %v3314_v56  ;;  %v3398_v55 = vld [vmem:[#allocation5 + $0x364] ss:$16 sps:$4 sm:$0xff]   ;;  %v3401_v56 = vld [vmem:[#allocation5 + $0x36c] ss:$16 sps:$4 sm:$0xff]  }
  0xb6   :  { %1798 = vmatpush1.bf16.msra.mxu0 %v3316_v57  ;;  %2010 = vmatpush1.bf16.msra.mxu1 %v3317_v58  ;;  %v3396_v57 = vld [vmem:[#allocation5 + $0x360] ss:$16 sps:$4 sm:$0xff]   ;;  %v3399_v58 = vld [vmem:[#allocation5 + $0x368] ss:$16 sps:$4 sm:$0xff]  }
  0xb7   :  { %1799 = vmatprep.subr.bf16.mxu0 %v3318_v59  ;;  %2011 = vmatprep.subr.bf16.mxu1 %v3320_v60  ;;  %v3404_v59 = vld [vmem:[#allocation5 + $0x384] ss:$16 sps:$4 sm:$0xff]   ;;  %v3407_v60 = vld [vmem:[#allocation5 + $0x38c] ss:$16 sps:$4 sm:$0xff]  }
  0xba   :  { %1800 = vmatpush1.bf16.msra.mxu0 %v3322_v61  ;;  %2012 = vmatpush1.bf16.msra.mxu1 %v3323_v62  ;;  %v3402_v61 = vld [vmem:[#allocation5 + $0x380] ss:$16 sps:$4 sm:$0xff]   ;;  %v3405_v62 = vld [vmem:[#allocation5 + $0x388] ss:$16 sps:$4 sm:$0xff]  }
  0xbb   :  { %1801 = vmatprep.subr.bf16.mxu0 %v3324_v63  ;;  %2013 = vmatprep.subr.bf16.mxu1 %v3326_v0  ;;  %v3410_v63 = vld [vmem:[#allocation5 + $0x3a4] ss:$16 sps:$4 sm:$0xff]   ;;  %v3413_v0 = vld [vmem:[#allocation5 + $0x3ac] ss:$16 sps:$4 sm:$0xff]  }
  0xbe   :  { %1802 = vmatpush1.bf16.msra.mxu0 %v3328_v1  ;;  %2014 = vmatpush1.bf16.msra.mxu1 %v3329_v2  ;;  %v3408_v1 = vld [vmem:[#allocation5 + $0x3a0] ss:$16 sps:$4 sm:$0xff]   ;;  %v3411_v2 = vld [vmem:[#allocation5 + $0x3a8] ss:$16 sps:$4 sm:$0xff]  }
  0xbf   :  { %1824 = vmatprep.subr.bf16.mxu0 %v3332_v3  ;;  %2036 = vmatprep.subr.bf16.mxu1 %v3335_v4  ;;  %v3416_v3 = vld [vmem:[#allocation5 + $0x3c4] ss:$16 sps:$4 sm:$0xff]   ;;  %v3419_v4 = vld [vmem:[#allocation5 + $0x3cc] ss:$16 sps:$4 sm:$0xff]  }
  0xc1   :  { %1804 = vmatmul.mubr.bf16.vlgmr.msra.gmra.mrb[0].mxu0 %v2736_v5  ;;  %2016 = vmatmul.mubr.bf16.vlgmr.msra.gmra.mrb[0].mxu1 %v2736_v5  ;;  %v3414_v5 = vld [vmem:[#allocation5 + $0x3c0] ss:$16 sps:$4 sm:$0xff]  }
  0xc2   :  { %1825 = vmatpush1.bf16.msra.mxu0 %v3330_v6  ;;  %2037 = vmatpush1.bf16.msra.mxu1 %v3333_v7  ;;  %v3417_v6 = vld [vmem:[#allocation5 + $0x3c8] ss:$16 sps:$4 sm:$0xff]   ;;  %v3422_v7 = vld [vmem:[#allocation5 + $0x3e4] ss:$16 sps:$4 sm:$0xff]  }
  0xc3   :  { %1826 = vmatprep.subr.bf16.mxu0 %v3338_v8  ;;  %2038 = vmatprep.subr.bf16.mxu1 %v3341_v9  ;;  %v3425_v8 = vld [vmem:[#allocation5 + $0x3ec] ss:$16 sps:$4 sm:$0xff]   ;;  %v3420_v9 = vld [vmem:[#allocation5 + $0x3e0] ss:$16 sps:$4 sm:$0xff]  }
  0xc4   :  { %1813 = vmatprep.mubr.bf16.mxu0 %v2745_v28  ;;  %2025 = vmatprep.mubr.bf16.mxu1 %v2745_v28  ;;  %v3438_v28 = vld [vmem:[#allocation5 + $0x440] ss:$16 sps:$4 sm:$0xff]  }
  0xc6   :  { %1827 = vmatpush1.bf16.msra.mxu0 %v3336_v10  ;;  %2039 = vmatpush1.bf16.msra.mxu1 %v3339_v11  ;;  %v3423_v10 = vld [vmem:[#allocation5 + $0x3e8] ss:$16 sps:$4 sm:$0xff]   ;;  %v3428_v11 = vld [vmem:[#allocation5 + $0x404] ss:$16 sps:$4 sm:$0xff]  }
  0xc7   :  { %1828 = vmatprep.subr.bf16.mxu0 %v3344_v12  ;;  %2040 = vmatprep.subr.bf16.mxu1 %v3347_v13  ;;  %v3431_v12 = vld [vmem:[#allocation5 + $0x40c] ss:$16 sps:$4 sm:$0xff]   ;;  %v3426_v13 = vld [vmem:[#allocation5 + $0x400] ss:$16 sps:$4 sm:$0xff]  }
  0xc9   :  { %1814 = vmatmul.mubr.bf16.gmra.mrb[4].mxu0 %v2744_v31  ;;  %2026 = vmatmul.mubr.bf16.gmra.mrb[4].mxu1 %v2744_v31  ;;  %v3449_v31 = vld [vmem:[#allocation5 + $0x46c] ss:$16 sps:$4 sm:$0xff]  }
  0xca   :  { %1829 = vmatpush1.bf16.msra.mxu0 %v3342_v14  ;;  %2041 = vmatpush1.bf16.msra.mxu1 %v3345_v15  ;;  %v3429_v14 = vld [vmem:[#allocation5 + $0x408] ss:$16 sps:$4 sm:$0xff]   ;;  %v2738_v15 = vcombine.low %v3996_v34, %v3998_v35  ;;  %v3452_v35 = vld [vmem:[#allocation5 + $0x484] ss:$16 sps:$4 sm:$0xff]  }
  0xcb   :  { %1830 = vmatprep.subr.bf16.mxu0 %v3350_v16  ;;  %2042 = vmatprep.subr.bf16.mxu1 %v3353_v17  ;;  %v126_v16 = vld [vmem:[#allocation2 + $0x48] sm:$0xff] }
  0xcc   :  { %1856 = vmatprep.mubr.bf16.mxu0 %v2739_v38  ;;  %2068 = vmatprep.mubr.bf16.mxu1 %v2739_v38  ;;  %v130_v17 = vld [vmem:[#allocation2 + $0x68] sm:$0xff] }
  0xcd   :  { %v2746_v26 = vcombine.low %v126_v16, %v130_v17  ;;  %v3447_v34 = vld [vmem:[#allocation5 + $0x468] ss:$16 sps:$4 sm:$0xff]  }
  0xce   :  { %1831 = vmatpush1.bf16.msra.mxu0 %v3348_v18  ;;  %2043 = vmatpush1.bf16.msra.mxu1 %v3351_v19  ;;  %v3434_v18 = vld [vmem:[#allocation5 + $0x424] ss:$16 sps:$4 sm:$0xff]   ;;  %v3437_v19 = vld [vmem:[#allocation5 + $0x42c] ss:$16 sps:$4 sm:$0xff]   ;;  %v3453_v38 = vld [vmem:[#allocation5 + $0x488] ss:$16 sps:$4 sm:$0xff]  }
  0xcf   :  { %1832 = vmatprep.subr.bf16.mxu0 %v3356_v20  ;;  %2044 = vmatprep.subr.bf16.mxu1 %v3359_v21  ;;  %v2747_v20 = vcombine.high %v126_v16, %v130_v17  ;;  %v3432_v21 = vld [vmem:[#allocation5 + $0x420] ss:$16 sps:$4 sm:$0xff]   ;;  %v3521_v16 = vld [vmem:[#allocation5 + $0x5ec] ss:$16 sps:$4 sm:$0xff]  }
  0xd0   :  { %v3516_v17 = vld [vmem:[#allocation5 + $0x5e0] ss:$16 sps:$4 sm:$0xff]  }
  0xd2   :  { %1833 = vmatpush1.bf16.msra.mxu0 %v3354_v22  ;;  %2045 = vmatpush1.bf16.msra.mxu1 %v3357_v23  ;;  %v3435_v22 = vld [vmem:[#allocation5 + $0x428] ss:$16 sps:$4 sm:$0xff]   ;;  %v3440_v23 = vld [vmem:[#allocation5 + $0x444] ss:$16 sps:$4 sm:$0xff]  }
  0xd3   :  { %1834 = vmatprep.subr.bf16.mxu0 %v3362_v24  ;;  %2046 = vmatprep.subr.bf16.mxu1 %v3365_v25  ;;  %v3443_v24 = vld [vmem:[#allocation5 + $0x44c] ss:$16 sps:$4 sm:$0xff]   ;;  %v4004_v25 = vld [vmem:[#allocation2 + $0x10] sm:$0xff] }
  0xd6   :  { %1835 = vmatpush1.bf16.msra.mxu0 %v3360_v29  ;;  %2047 = vmatpush1.bf16.msra.mxu1 %v3363_v30  ;;  %v3441_v29 = vld [vmem:[#allocation5 + $0x448] ss:$16 sps:$4 sm:$0xff]   ;;  %v3446_v30 = vld [vmem:[#allocation5 + $0x464] ss:$16 sps:$4 sm:$0xff]  }
  0xd7   :  { %1836 = vmatprep.subr.bf16.mxu0 %v3368_v32  ;;  %2048 = vmatprep.subr.bf16.mxu1 %v3371_v33  ;;  %v2741_v32 = vcombine.high %v4004_v25, %v4006_v27  ;;  %v3444_v33 = vld [vmem:[#allocation5 + $0x460] ss:$16 sps:$4 sm:$0xff]  }
  0xda   :  { %1837 = vmatpush1.bf16.msra.mxu0 %v3366_v36  ;;  %2049 = vmatpush1.bf16.msra.mxu1 %v3369_v37  ;;  %v3455_v36 = vld [vmem:[#allocation5 + $0x48c] ss:$16 sps:$4 sm:$0xff]   ;;  %v3450_v37 = vld [vmem:[#allocation5 + $0x480] ss:$16 sps:$4 sm:$0xff]  }
  0xdb   :  { %1838 = vmatprep.subr.bf16.mxu0 %v3374_v39  ;;  %2050 = vmatprep.subr.bf16.mxu1 %v3377_v40  ;;  %v3458_v39 = vld [vmem:[#allocation5 + $0x4a4] ss:$16 sps:$4 sm:$0xff]   ;;  %v3461_v40 = vld [vmem:[#allocation5 + $0x4ac] ss:$16 sps:$4 sm:$0xff]  }
  0xde   :  { %1839 = vmatpush1.bf16.msra.mxu0 %v3372_v41  ;;  %2051 = vmatpush1.bf16.msra.mxu1 %v3375_v42  ;;  %v3456_v41 = vld [vmem:[#allocation5 + $0x4a0] ss:$16 sps:$4 sm:$0xff]   ;;  %v3459_v42 = vld [vmem:[#allocation5 + $0x4a8] ss:$16 sps:$4 sm:$0xff]  }
  0xdf   :  { %1840 = vmatprep.subr.bf16.mxu0 %v3380_v43  ;;  %2052 = vmatprep.subr.bf16.mxu1 %v3383_v44  ;;  %v3464_v43 = vld [vmem:[#allocation5 + $0x4c4] ss:$16 sps:$4 sm:$0xff]   ;;  %v3467_v44 = vld [vmem:[#allocation5 + $0x4cc] ss:$16 sps:$4 sm:$0xff]  }
  0xe2   :  { %1841 = vmatpush1.bf16.msra.mxu0 %v3378_v45  ;;  %2053 = vmatpush1.bf16.msra.mxu1 %v3381_v46  ;;  %v3462_v45 = vld [vmem:[#allocation5 + $0x4c0] ss:$16 sps:$4 sm:$0xff]   ;;  %v3465_v46 = vld [vmem:[#allocation5 + $0x4c8] ss:$16 sps:$4 sm:$0xff]  }
  0xe3   :  { %1842 = vmatprep.subr.bf16.mxu0 %v3386_v47  ;;  %2054 = vmatprep.subr.bf16.mxu1 %v3389_v48  ;;  %v3470_v47 = vld [vmem:[#allocation5 + $0x4e4] ss:$16 sps:$4 sm:$0xff]   ;;  %v3473_v48 = vld [vmem:[#allocation5 + $0x4ec] ss:$16 sps:$4 sm:$0xff]  }
  0xe6   :  { %1843 = vmatpush1.bf16.msra.mxu0 %v3384_v49  ;;  %2055 = vmatpush1.bf16.msra.mxu1 %v3387_v50  ;;  %v3468_v49 = vld [vmem:[#allocation5 + $0x4e0] ss:$16 sps:$4 sm:$0xff]   ;;  %v3471_v50 = vld [vmem:[#allocation5 + $0x4e8] ss:$16 sps:$4 sm:$0xff]  }
  0xe7   :  { %1844 = vmatprep.subr.bf16.mxu0 %v3392_v51  ;;  %2056 = vmatprep.subr.bf16.mxu1 %v3395_v52  ;;  %v3476_v51 = vld [vmem:[#allocation5 + $0x504] ss:$16 sps:$4 sm:$0xff]   ;;  %v3479_v52 = vld [vmem:[#allocation5 + $0x50c] ss:$16 sps:$4 sm:$0xff]  }
  0xea   :  { %1845 = vmatpush1.bf16.msra.mxu0 %v3390_v53  ;;  %2057 = vmatpush1.bf16.msra.mxu1 %v3393_v54  ;;  %v3474_v53 = vld [vmem:[#allocation5 + $0x500] ss:$16 sps:$4 sm:$0xff]   ;;  %v3477_v54 = vld [vmem:[#allocation5 + $0x508] ss:$16 sps:$4 sm:$0xff]  }
  0xeb   :  { %1846 = vmatprep.subr.bf16.mxu0 %v3398_v55  ;;  %2058 = vmatprep.subr.bf16.mxu1 %v3401_v56  ;;  %v3482_v55 = vld [vmem:[#allocation5 + $0x524] ss:$16 sps:$4 sm:$0xff]   ;;  %v3485_v56 = vld [vmem:[#allocation5 + $0x52c] ss:$16 sps:$4 sm:$0xff]  }
  0xee   :  { %1847 = vmatpush1.bf16.msra.mxu0 %v3396_v57  ;;  %2059 = vmatpush1.bf16.msra.mxu1 %v3399_v58  ;;  %v3480_v57 = vld [vmem:[#allocation5 + $0x520] ss:$16 sps:$4 sm:$0xff]   ;;  %v3483_v58 = vld [vmem:[#allocation5 + $0x528] ss:$16 sps:$4 sm:$0xff]  }
  0xef   :  { %1848 = vmatprep.subr.bf16.mxu0 %v3404_v59  ;;  %2060 = vmatprep.subr.bf16.mxu1 %v3407_v60  ;;  %v3488_v59 = vld [vmem:[#allocation5 + $0x544] ss:$16 sps:$4 sm:$0xff]   ;;  %v3491_v60 = vld [vmem:[#allocation5 + $0x54c] ss:$16 sps:$4 sm:$0xff]  }
  0xf2   :  { %1849 = vmatpush1.bf16.msra.mxu0 %v3402_v61  ;;  %2061 = vmatpush1.bf16.msra.mxu1 %v3405_v62  ;;  %v3486_v61 = vld [vmem:[#allocation5 + $0x540] ss:$16 sps:$4 sm:$0xff]   ;;  %v3489_v62 = vld [vmem:[#allocation5 + $0x548] ss:$16 sps:$4 sm:$0xff]  }
  0xf3   :  { %1850 = vmatprep.subr.bf16.mxu0 %v3410_v63  ;;  %2062 = vmatprep.subr.bf16.mxu1 %v3413_v0  ;;  %v3494_v63 = vld [vmem:[#allocation5 + $0x564] ss:$16 sps:$4 sm:$0xff]   ;;  %v3497_v0 = vld [vmem:[#allocation5 + $0x56c] ss:$16 sps:$4 sm:$0xff]  }
  0xf6   :  { %1851 = vmatpush1.bf16.msra.mxu0 %v3408_v1  ;;  %2063 = vmatpush1.bf16.msra.mxu1 %v3411_v2  ;;  %v3492_v1 = vld [vmem:[#allocation5 + $0x560] ss:$16 sps:$4 sm:$0xff]   ;;  %v3495_v2 = vld [vmem:[#allocation5 + $0x568] ss:$16 sps:$4 sm:$0xff]  }
  0xf7   :  { %1852 = vmatprep.subr.bf16.mxu0 %v3416_v3  ;;  %2064 = vmatprep.subr.bf16.mxu1 %v3419_v4  ;;  %v3500_v3 = vld [vmem:[#allocation5 + $0x584] ss:$16 sps:$4 sm:$0xff]   ;;  %v3503_v4 = vld [vmem:[#allocation5 + $0x58c] ss:$16 sps:$4 sm:$0xff]  }
  0xfa   :  { %1853 = vmatpush1.bf16.msra.mxu0 %v3414_v5  ;;  %2065 = vmatpush1.bf16.msra.mxu1 %v3417_v6  ;;  %v3498_v5 = vld [vmem:[#allocation5 + $0x580] ss:$16 sps:$4 sm:$0xff]   ;;  %v3501_v6 = vld [vmem:[#allocation5 + $0x588] ss:$16 sps:$4 sm:$0xff]  }
  0xfb   :  { %1854 = vmatprep.subr.bf16.mxu0 %v3422_v7  ;;  %2066 = vmatprep.subr.bf16.mxu1 %v3425_v8  ;;  %v3506_v7 = vld [vmem:[#allocation5 + $0x5a4] ss:$16 sps:$4 sm:$0xff]   ;;  %v3509_v8 = vld [vmem:[#allocation5 + $0x5ac] ss:$16 sps:$4 sm:$0xff]  }
  0xfe   :  { %1855 = vmatpush1.bf16.msra.mxu0 %v3420_v9  ;;  %2067 = vmatpush1.bf16.msra.mxu1 %v3423_v10  ;;  %v3504_v9 = vld [vmem:[#allocation5 + $0x5a0] ss:$16 sps:$4 sm:$0xff]   ;;  %v3507_v10 = vld [vmem:[#allocation5 + $0x5a8] ss:$16 sps:$4 sm:$0xff]  }
  0xff   :  { %1877 = vmatprep.subr.bf16.mxu0 %v3428_v11  ;;  %2089 = vmatprep.subr.bf16.mxu1 %v3431_v12  ;;  %v3512_v11 = vld [vmem:[#allocation5 + $0x5c4] ss:$16 sps:$4 sm:$0xff]   ;;  %v3515_v12 = vld [vmem:[#allocation5 + $0x5cc] ss:$16 sps:$4 sm:$0xff]  }
 0x101   :  { %1857 = vmatmul.mubr.bf16.vlgmr.msra.gmra.mrb[0].mxu0 %v2738_v15  ;;  %2069 = vmatmul.mubr.bf16.vlgmr.msra.gmra.mrb[0].mxu1 %v2738_v15  ;;  %v3518_v15 = vld [vmem:[#allocation5 + $0x5e4] ss:$16 sps:$4 sm:$0xff]  }
 0x102   :  { %1878 = vmatpush1.bf16.msra.mxu0 %v3426_v13  ;;  %2090 = vmatpush1.bf16.msra.mxu1 %v3429_v14  ;;  %v3510_v13 = vld [vmem:[#allocation5 + $0x5c0] ss:$16 sps:$4 sm:$0xff]   ;;  %v3513_v14 = vld [vmem:[#allocation5 + $0x5c8] ss:$16 sps:$4 sm:$0xff]  }
 0x103   :  { %1879 = vmatprep.subr.bf16.mxu0 %v3434_v18  ;;  %2091 = vmatprep.subr.bf16.mxu1 %v3437_v19  ;;  %v3519_v18 = vld [vmem:[#allocation5 + $0x5e8] ss:$16 sps:$4 sm:$0xff]   ;;  %v3524_v19 = vld [vmem:[#allocation5 + $0x604] ss:$16 sps:$4 sm:$0xff]  }
 0x104   :  { %1866 = vmatprep.mubr.bf16.mxu0 %v2747_v20  ;;  %2078 = vmatprep.mubr.bf16.mxu1 %v2747_v20  ;;  %v3527_v20 = vld [vmem:[#allocation5 + $0x60c] ss:$16 sps:$4 sm:$0xff]  }
 0x106   :  { %1880 = vmatpush1.bf16.msra.mxu0 %v3432_v21  ;;  %2092 = vmatpush1.bf16.msra.mxu1 %v3435_v22  ;;  %v3522_v21 = vld [vmem:[#allocation5 + $0x600] ss:$16 sps:$4 sm:$0xff]   ;;  %v3525_v22 = vld [vmem:[#allocation5 + $0x608] ss:$16 sps:$4 sm:$0xff]  }
 0x107   :  { %1881 = vmatprep.subr.bf16.mxu0 %v3440_v23  ;;  %2093 = vmatprep.subr.bf16.mxu1 %v3443_v24  ;;  %v127_v23 = vld [vmem:[#allocation2 + $0x50] sm:$0xff]  ;;  %v2740_v24 = vcombine.low %v4004_v25, %v4006_v27  ;;  %v3537_v27 = vld [vmem:[#allocation5 + $0x648] ss:$16 sps:$4 sm:$0xff]  }
 0x108   :  { %v3534_v25 = vld [vmem:[#allocation5 + $0x640] ss:$16 sps:$4 sm:$0xff]  }
 0x109   :  { %1867 = vmatmul.mubr.bf16.gmra.mrb[4].mxu0 %v2746_v26  ;;  %2079 = vmatmul.mubr.bf16.gmra.mrb[4].mxu1 %v2746_v26  ;;  %v131_v26 = vld [vmem:[#allocation2 + $0x70] sm:$0xff] }
 0x10a   :  { %1882 = vmatpush1.bf16.msra.mxu0 %v3438_v28  ;;  %2094 = vmatpush1.bf16.msra.mxu1 %v3441_v29  ;;  %v3530_v28 = vld [vmem:[#allocation5 + $0x624] ss:$16 sps:$4 sm:$0xff]   ;;  %v3533_v29 = vld [vmem:[#allocation5 + $0x62c] ss:$16 sps:$4 sm:$0xff]  }
 0x10b   :  { %1883 = vmatprep.subr.bf16.mxu0 %v3446_v30  ;;  %2095 = vmatprep.subr.bf16.mxu1 %v3449_v31  ;;  %v3528_v30 = vld [vmem:[#allocation5 + $0x620] ss:$16 sps:$4 sm:$0xff]   ;;  %v3531_v31 = vld [vmem:[#allocation5 + $0x628] ss:$16 sps:$4 sm:$0xff]  }
 0x10c   :  { %1909 = vmatprep.mubr.bf16.mxu0 %v2741_v32  ;;  %2121 = vmatprep.mubr.bf16.mxu1 %v2741_v32  ;;  %v2749_v32 = vcombine.high %v127_v23, %v131_v26 }
 0x10e   :  { %1884 = vmatpush1.bf16.msra.mxu0 %v3444_v33  ;;  %2096 = vmatpush1.bf16.msra.mxu1 %v3447_v34  ;;  %v3536_v33 = vld [vmem:[#allocation5 + $0x644] ss:$16 sps:$4 sm:$0xff]   ;;  %v3539_v34 = vld [vmem:[#allocation5 + $0x64c] ss:$16 sps:$4 sm:$0xff]  }
 0x10f   :  { %1885 = vmatprep.subr.bf16.mxu0 %v3452_v35  ;;  %2097 = vmatprep.subr.bf16.mxu1 %v3455_v36  ;;  %v4012_v35 = vld [vmem:[#allocation2 + $0x18] sm:$0xff] }
 0x110   :  { %v4014_v36 = vld [vmem:[#allocation2 + $0x38] sm:$0xff] }
 0x112   :  { %1886 = vmatpush1.bf16.msra.mxu0 %v3450_v37  ;;  %2098 = vmatpush1.bf16.msra.mxu1 %v3453_v38  ;;  %v3542_v37 = vld [vmem:[#allocation5 + $0x664] ss:$16 sps:$4 sm:$0xff]   ;;  %v3545_v38 = vld [vmem:[#allocation5 + $0x66c] ss:$16 sps:$4 sm:$0xff]  }
 0x113   :  { %1887 = vmatprep.subr.bf16.mxu0 %v3458_v39  ;;  %2099 = vmatprep.subr.bf16.mxu1 %v3461_v40  ;;  %v2748_v39 = vcombine.low %v127_v23, %v131_v26  ;;  %v3540_v40 = vld [vmem:[#allocation5 + $0x660] ss:$16 sps:$4 sm:$0xff]   ;;  %v3614_v23 = vld [vmem:[#allocation5 + $0x7e4] ss:$16 sps:$4 sm:$0xff]  }
 0x114   :  { %v3612_v26 = vld [vmem:[#allocation5 + $0x7e0] ss:$16 sps:$4 sm:$0xff]  }
 0x116   :  { %1888 = vmatpush1.bf16.msra.mxu0 %v3456_v41  ;;  %2100 = vmatpush1.bf16.msra.mxu1 %v3459_v42  ;;  %v3543_v41 = vld [vmem:[#allocation5 + $0x668] ss:$16 sps:$4 sm:$0xff]   ;;  %v2743_v42 = vcombine.high %v4012_v35, %v4014_v36 }
 0x117   :  { %1889 = vmatprep.subr.bf16.mxu0 %v3464_v43  ;;  %2101 = vmatprep.subr.bf16.mxu1 %v3467_v44  ;;  %v3548_v43 = vld [vmem:[#allocation5 + $0x684] ss:$16 sps:$4 sm:$0xff]   ;;  %v3551_v44 = vld [vmem:[#allocation5 + $0x68c] ss:$16 sps:$4 sm:$0xff]  }
 0x11a   :  { %1890 = vmatpush1.bf16.msra.mxu0 %v3462_v45  ;;  %2102 = vmatpush1.bf16.msra.mxu1 %v3465_v46  ;;  %v3546_v45 = vld [vmem:[#allocation5 + $0x680] ss:$16 sps:$4 sm:$0xff]   ;;  %v3549_v46 = vld [vmem:[#allocation5 + $0x688] ss:$16 sps:$4 sm:$0xff]  }
 0x11b   :  { %1891 = vmatprep.subr.bf16.mxu0 %v3470_v47  ;;  %2103 = vmatprep.subr.bf16.mxu1 %v3473_v48  ;;  %v3554_v47 = vld [vmem:[#allocation5 + $0x6a4] ss:$16 sps:$4 sm:$0xff]   ;;  %v3557_v48 = vld [vmem:[#allocation5 + $0x6ac] ss:$16 sps:$4 sm:$0xff]  }
 0x11e   :  { %1892 = vmatpush1.bf16.msra.mxu0 %v3468_v49  ;;  %2104 = vmatpush1.bf16.msra.mxu1 %v3471_v50  ;;  %v3552_v49 = vld [vmem:[#allocation5 + $0x6a0] ss:$16 sps:$4 sm:$0xff]   ;;  %v3555_v50 = vld [vmem:[#allocation5 + $0x6a8] ss:$16 sps:$4 sm:$0xff]  }
 0x11f   :  { %1893 = vmatprep.subr.bf16.mxu0 %v3476_v51  ;;  %2105 = vmatprep.subr.bf16.mxu1 %v3479_v52  ;;  %v3560_v51 = vld [vmem:[#allocation5 + $0x6c4] ss:$16 sps:$4 sm:$0xff]   ;;  %v3563_v52 = vld [vmem:[#allocation5 + $0x6cc] ss:$16 sps:$4 sm:$0xff]  }
 0x122   :  { %1894 = vmatpush1.bf16.msra.mxu0 %v3474_v53  ;;  %2106 = vmatpush1.bf16.msra.mxu1 %v3477_v54  ;;  %v3558_v53 = vld [vmem:[#allocation5 + $0x6c0] ss:$16 sps:$4 sm:$0xff]   ;;  %v3561_v54 = vld [vmem:[#allocation5 + $0x6c8] ss:$16 sps:$4 sm:$0xff]  }
 0x123   :  { %1895 = vmatprep.subr.bf16.mxu0 %v3482_v55  ;;  %2107 = vmatprep.subr.bf16.mxu1 %v3485_v56  ;;  %v3566_v55 = vld [vmem:[#allocation5 + $0x6e4] ss:$16 sps:$4 sm:$0xff]   ;;  %v3569_v56 = vld [vmem:[#allocation5 + $0x6ec] ss:$16 sps:$4 sm:$0xff]  }
 0x126   :  { %1896 = vmatpush1.bf16.msra.mxu0 %v3480_v57  ;;  %2108 = vmatpush1.bf16.msra.mxu1 %v3483_v58  ;;  %v3564_v57 = vld [vmem:[#allocation5 + $0x6e0] ss:$16 sps:$4 sm:$0xff]   ;;  %v3567_v58 = vld [vmem:[#allocation5 + $0x6e8] ss:$16 sps:$4 sm:$0xff]  }
 0x127   :  { %1897 = vmatprep.subr.bf16.mxu0 %v3488_v59  ;;  %2109 = vmatprep.subr.bf16.mxu1 %v3491_v60  ;;  %v3572_v59 = vld [vmem:[#allocation5 + $0x704] ss:$16 sps:$4 sm:$0xff]   ;;  %v3575_v60 = vld [vmem:[#allocation5 + $0x70c] ss:$16 sps:$4 sm:$0xff]  }
 0x12a   :  { %1898 = vmatpush1.bf16.msra.mxu0 %v3486_v61  ;;  %2110 = vmatpush1.bf16.msra.mxu1 %v3489_v62  ;;  %v3570_v61 = vld [vmem:[#allocation5 + $0x700] ss:$16 sps:$4 sm:$0xff]   ;;  %v3573_v62 = vld [vmem:[#allocation5 + $0x708] ss:$16 sps:$4 sm:$0xff]  }
 0x12b   :  { %1899 = vmatprep.subr.bf16.mxu0 %v3494_v63  ;;  %2111 = vmatprep.subr.bf16.mxu1 %v3497_v0  ;;  %v3578_v63 = vld [vmem:[#allocation5 + $0x724] ss:$16 sps:$4 sm:$0xff]   ;;  %v3581_v0 = vld [vmem:[#allocation5 + $0x72c] ss:$16 sps:$4 sm:$0xff]  }
 0x12e   :  { %1900 = vmatpush1.bf16.msra.mxu0 %v3492_v1  ;;  %2112 = vmatpush1.bf16.msra.mxu1 %v3495_v2  ;;  %v3576_v1 = vld [vmem:[#allocation5 + $0x720] ss:$16 sps:$4 sm:$0xff]   ;;  %v3579_v2 = vld [vmem:[#allocation5 + $0x728] ss:$16 sps:$4 sm:$0xff]  }
 0x12f   :  { %1901 = vmatprep.subr.bf16.mxu0 %v3500_v3  ;;  %2113 = vmatprep.subr.bf16.mxu1 %v3503_v4  ;;  %v3584_v3 = vld [vmem:[#allocation5 + $0x744] ss:$16 sps:$4 sm:$0xff]   ;;  %v3587_v4 = vld [vmem:[#allocation5 + $0x74c] ss:$16 sps:$4 sm:$0xff]  }
 0x132   :  { %1902 = vmatpush1.bf16.msra.mxu0 %v3498_v5  ;;  %2114 = vmatpush1.bf16.msra.mxu1 %v3501_v6  ;;  %v3582_v5 = vld [vmem:[#allocation5 + $0x740] ss:$16 sps:$4 sm:$0xff]   ;;  %v3585_v6 = vld [vmem:[#allocation5 + $0x748] ss:$16 sps:$4 sm:$0xff]  }
 0x133   :  { %1903 = vmatprep.subr.bf16.mxu0 %v3506_v7  ;;  %2115 = vmatprep.subr.bf16.mxu1 %v3509_v8  ;;  %v3590_v7 = vld [vmem:[#allocation5 + $0x764] ss:$16 sps:$4 sm:$0xff]   ;;  %v3593_v8 = vld [vmem:[#allocation5 + $0x76c] ss:$16 sps:$4 sm:$0xff]  }
 0x136   :  { %1904 = vmatpush1.bf16.msra.mxu0 %v3504_v9  ;;  %2116 = vmatpush1.bf16.msra.mxu1 %v3507_v10  ;;  %v3588_v9 = vld [vmem:[#allocation5 + $0x760] ss:$16 sps:$4 sm:$0xff]   ;;  %v3591_v10 = vld [vmem:[#allocation5 + $0x768] ss:$16 sps:$4 sm:$0xff]  }
 0x137   :  { %1905 = vmatprep.subr.bf16.mxu0 %v3512_v11  ;;  %2117 = vmatprep.subr.bf16.mxu1 %v3515_v12  ;;  %v3596_v11 = vld [vmem:[#allocation5 + $0x784] ss:$16 sps:$4 sm:$0xff]   ;;  %v3599_v12 = vld [vmem:[#allocation5 + $0x78c] ss:$16 sps:$4 sm:$0xff]  }
 0x13a   :  { %1906 = vmatpush1.bf16.msra.mxu0 %v3510_v13  ;;  %2118 = vmatpush1.bf16.msra.mxu1 %v3513_v14  ;;  %v3594_v13 = vld [vmem:[#allocation5 + $0x780] ss:$16 sps:$4 sm:$0xff]   ;;  %v3597_v14 = vld [vmem:[#allocation5 + $0x788] ss:$16 sps:$4 sm:$0xff]  }
 0x13b   :  { %1907 = vmatprep.subr.bf16.mxu0 %v3518_v15  ;;  %2119 = vmatprep.subr.bf16.mxu1 %v3521_v16  ;;  %v3602_v15 = vld [vmem:[#allocation5 + $0x7a4] ss:$16 sps:$4 sm:$0xff]   ;;  %v3605_v16 = vld [vmem:[#allocation5 + $0x7ac] ss:$16 sps:$4 sm:$0xff]  }
 0x13e   :  { %1908 = vmatpush1.bf16.msra.mxu0 %v3516_v17  ;;  %2120 = vmatpush1.bf16.msra.mxu1 %v3519_v18  ;;  %v3600_v17 = vld [vmem:[#allocation5 + $0x7a0] ss:$16 sps:$4 sm:$0xff]   ;;  %v3603_v18 = vld [vmem:[#allocation5 + $0x7a8] ss:$16 sps:$4 sm:$0xff]  }
 0x13f   :  { %1930 = vmatprep.subr.bf16.mxu0 %v3524_v19  ;;  %2142 = vmatprep.subr.bf16.mxu1 %v3527_v20  ;;  %v3608_v19 = vld [vmem:[#allocation5 + $0x7c4] ss:$16 sps:$4 sm:$0xff]   ;;  %v3611_v20 = vld [vmem:[#allocation5 + $0x7cc] ss:$16 sps:$4 sm:$0xff]  }
 0x141   :  { %1910 = vmatmul.mubr.bf16.vlgmr.msra.gmra.mrb[0].mxu0 %v2740_v24  ;;  %2122 = vmatmul.mubr.bf16.vlgmr.msra.gmra.mrb[0].mxu1 %v2740_v24  ;;  %v3617_v24 = vld [vmem:[#allocation5 + $0x7ec] ss:$16 sps:$4 sm:$0xff]  }
 0x142   :  { %1931 = vmatpush1.bf16.msra.mxu0 %v3522_v21  ;;  %2143 = vmatpush1.bf16.msra.mxu1 %v3525_v22  ;;  %v3606_v21 = vld [vmem:[#allocation5 + $0x7c0] ss:$16 sps:$4 sm:$0xff]   ;;  %v3609_v22 = vld [vmem:[#allocation5 + $0x7c8] ss:$16 sps:$4 sm:$0xff]  }
 0x143   :  { %1932 = vmatprep.subr.bf16.mxu0 %v3530_v28  ;;  %2144 = vmatprep.subr.bf16.mxu1 %v3533_v29  ;;  %v3615_v28 = vld [vmem:[#allocation5 + $0x7e8] ss:$16 sps:$4 sm:$0xff]  }
 0x144   :  { %1919 = vmatprep.mubr.bf16.mxu0 %v2749_v32  ;;  %2131 = vmatprep.mubr.bf16.mxu1 %v2749_v32  ;;  %v128_v29 = vld [vmem:[#allocation2 + $0x58] sm:$0xff]  ;;  %v3619_v32 = vld [vmem:[#allocation8 + $0xc0] sm:$0xff]  }
 0x146   :  { %1933 = vmatpush1.bf16.msra.mxu0 %v3528_v30  ;;  %2145 = vmatpush1.bf16.msra.mxu1 %v3531_v31  ;;  %v132_v30 = vld [vmem:[#allocation2 + $0x78] sm:$0xff]  ;;  %v3618_v31 = vld [vmem:[#allocation8 + $0x40] sm:$0xff]  }
 0x147   :  { %1934 = vmatprep.subr.bf16.mxu0 %v3536_v33  ;;  %2146 = vmatprep.subr.bf16.mxu1 %v3539_v34  ;;  %v2742_v33 = vcombine.low %v4012_v35, %v4014_v36  ;;  %v2751_v34 = vcombine.high %v128_v29, %v132_v30  ;;  %v3626_v35 = vld [vmem:[#allocation8 + $0x50] sm:$0xff]  }
 0x148   :  { %v3627_v36 = vld [vmem:[#allocation8 + $0xd0] sm:$0xff]  }
 0x149   :  { %1920 = vmatmul.mubr.bf16.gmra.mrb[4].mxu0 %v2748_v39  ;;  %2132 = vmatmul.mubr.bf16.gmra.mrb[4].mxu1 %v2748_v39  ;;  %v3624_v39 = vld [vmem:[#allocation8 + $0x8] sm:$0xff]  }
 0x14a   :  { %1935 = vmatpush1.bf16.msra.mxu0 %v3534_v25  ;;  %2147 = vmatpush1.bf16.msra.mxu1 %v3537_v27  ;;  %v3620_v25 = vld [vmem:[#allocation8] sm:$0xff]  }
 0x14b   :  { %1936 = vmatprep.subr.bf16.mxu0 %v3542_v37  ;;  %2148 = vmatprep.subr.bf16.mxu1 %v3545_v38  ;;  %v3621_v27 = vld [vmem:[#allocation8 + $0x80] sm:$0xff]   ;;  %v3622_v37 = vld [vmem:[#allocation8 + $0x48] sm:$0xff]  }
 0x14c   :  { %1962 = vmatprep.mubr.bf16.mxu0 %v2743_v42  ;;  %2174 = vmatprep.mubr.bf16.mxu1 %v2743_v42  ;;  %v3623_v38 = vld [vmem:[#allocation8 + $0xc8] sm:$0xff]   ;;  %v3628_v42 = vld [vmem:[#allocation8 + $0x10] sm:$0xff]  }
 0x14e   :  { %1937 = vmatpush1.bf16.msra.mxu0 %v3540_v40  ;;  %2149 = vmatpush1.bf16.msra.mxu1 %v3543_v41  ;;  %v3625_v40 = vld [vmem:[#allocation8 + $0x88] sm:$0xff]   ;;  %v2750_v41 = vcombine.low %v128_v29, %v132_v30 }
 0x14f   :  { %1938 = vmatprep.subr.bf16.mxu0 %v3548_v43  ;;  %2150 = vmatprep.subr.bf16.mxu1 %v3551_v44  ;;  %v3629_v43 = vld [vmem:[#allocation8 + $0x90] sm:$0xff]   ;;  %v3630_v44 = vld [vmem:[#allocation8 + $0x58] sm:$0xff]  }
 0x152   :  { %1939 = vmatpush1.bf16.msra.mxu0 %v3546_v45  ;;  %2151 = vmatpush1.bf16.msra.mxu1 %v3549_v46  ;;  %v3631_v45 = vld [vmem:[#allocation8 + $0xd8] sm:$0xff]  }
 0x153   :  { %1940 = vmatprep.subr.bf16.mxu0 %v3554_v47  ;;  %2152 = vmatprep.subr.bf16.mxu1 %v3557_v48  ;;  %v3632_v46 = vld [vmem:[#allocation8 + $0x18] sm:$0xff]   ;;  %v3634_v48 = vld [vmem:[#allocation8 + $0x60] sm:$0xff]  }
 0x154   :  { %v3633_v47 = vld [vmem:[#allocation8 + $0x98] sm:$0xff]  }
 0x156   :  { %1941 = vmatpush1.bf16.msra.mxu0 %v3552_v49  ;;  %2153 = vmatpush1.bf16.msra.mxu1 %v3555_v50  ;;  %v3635_v49 = vld [vmem:[#allocation8 + $0xe0] sm:$0xff]  }
 0x157   :  { %1942 = vmatprep.subr.bf16.mxu0 %v3560_v51  ;;  %2154 = vmatprep.subr.bf16.mxu1 %v3563_v52  ;;  %v3636_v50 = vld [vmem:[#allocation8 + $0x20] sm:$0xff]   ;;  %v3638_v52 = vld [vmem:[#allocation8 + $0x68] sm:$0xff]  }
 0x158   :  { %v3637_v51 = vld [vmem:[#allocation8 + $0xa0] sm:$0xff]  }
 0x15a   :  { %1943 = vmatpush1.bf16.msra.mxu0 %v3558_v53  ;;  %2155 = vmatpush1.bf16.msra.mxu1 %v3561_v54  ;;  %v3639_v53 = vld [vmem:[#allocation8 + $0xe8] sm:$0xff]  }
 0x15b   :  { %1944 = vmatprep.subr.bf16.mxu0 %v3566_v55  ;;  %2156 = vmatprep.subr.bf16.mxu1 %v3569_v56  ;;  %v3640_v54 = vld [vmem:[#allocation8 + $0x28] sm:$0xff]   ;;  %v3642_v56 = vld [vmem:[#allocation8 + $0x70] sm:$0xff]  }
 0x15c   :  { %v3641_v55 = vld [vmem:[#allocation8 + $0xa8] sm:$0xff]  }
 0x15e   :  { %1945 = vmatpush1.bf16.msra.mxu0 %v3564_v57  ;;  %2157 = vmatpush1.bf16.msra.mxu1 %v3567_v58  ;;  %v3643_v57 = vld [vmem:[#allocation8 + $0xf0] sm:$0xff]  }
 0x15f   :  { %1946 = vmatprep.subr.bf16.mxu0 %v3572_v59  ;;  %2158 = vmatprep.subr.bf16.mxu1 %v3575_v60  ;;  %v3644_v58 = vld [vmem:[#allocation8 + $0x30] sm:$0xff]   ;;  %v3646_v60 = vld [vmem:[#allocation8 + $0x78] sm:$0xff]  }
 0x160   :  { %v3645_v59 = vld [vmem:[#allocation8 + $0xb0] sm:$0xff]  }
 0x162   :  { %1947 = vmatpush1.bf16.msra.mxu0 %v3570_v61  ;;  %2159 = vmatpush1.bf16.msra.mxu1 %v3573_v62  ;;  %v3647_v61 = vld [vmem:[#allocation8 + $0xf8] sm:$0xff]  }
 0x163   :  { %1948 = vmatprep.subr.bf16.mxu0 %v3578_v63  ;;  %2160 = vmatprep.subr.bf16.mxu1 %v3581_v0  ;;  %v3648_v62 = vld [vmem:[#allocation8 + $0x38] sm:$0xff]   ;;  %v3650_v0 = vld [vmem:[#allocation11] sm:$0xff]  }
 0x164   :  { %v3649_v63 = vld [vmem:[#allocation8 + $0xb8] sm:$0xff]  }
 0x166   :  { %1949 = vmatpush1.bf16.msra.mxu0 %v3576_v1  ;;  %2161 = vmatpush1.bf16.msra.mxu1 %v3579_v2  ;;  %v391_v1 = vlaneseq }
 0x167   :  { %1950 = vmatprep.subr.bf16.mxu0 %v3584_v3  ;;  %2162 = vmatprep.subr.bf16.mxu1 %v3587_v4 }
 0x168   :  { %v392_v2 = vshrl.u32 %v391_v1, 7  ;;  %v3655_v1 = vld [vmem:[#allocation11 + $0x28] sm:$0xff]  }
 0x16a   :  { %1951 = vmatpush1.bf16.msra.mxu0 %v3582_v5  ;;  %2163 = vmatpush1.bf16.msra.mxu1 %v3585_v6  ;;  %v393_v3 = vsub.s32 0, %v392_v2  ;;  %v401_v4 = vsub.s32 2, %v392_v2  ;;  %v389_v5 = vld [vmem:[#allocation7] sm:$0xf]  ;;  %v397_v6 = vsub.s32 1, %v392_v2 }
 0x16b   :  { %1952 = vmatprep.subr.bf16.mxu0 %v3590_v7  ;;  %2164 = vmatprep.subr.bf16.mxu1 %v3593_v8  ;;  %v405_v7 = vsub.s32 3, %v392_v2  ;;  %v3656_v2 = vld [vmem:[#allocation11 + $0x30] sm:$0xff]  }
 0x16c   :  { %v394_v8 = vrot.slane %v389_v5, %v393_v3  ;;  %v3657_v3 = vld [vmem:[#allocation11 + $0x38] sm:$0xff]  }
 0x16e   :  { %1953 = vmatpush1.bf16.msra.mxu0 %v3588_v9  ;;  %2165 = vmatpush1.bf16.msra.mxu1 %v3591_v10  ;;  %v402_v9 = vrot.slane %v389_v5, %v401_v4 }
 0x16f   :  { %1954 = vmatprep.subr.bf16.mxu0 %v3596_v11  ;;  %2166 = vmatprep.subr.bf16.mxu1 %v3599_v12  ;;  %v398_v12 = vrot.slane %v389_v5, %v397_v6  ;;  %v3008_v6 = vld [vmem:[#allocation10] ss:$0 sm:$0xff] }
 0x172   :  { %1955 = vmatpush1.bf16.msra.mxu0 %v3594_v13  ;;  %2167 = vmatpush1.bf16.msra.mxu1 %v3597_v14  ;;  %v406_v13 = vrot.slane %v389_v5, %v405_v7 }
 0x173   :  { %1956 = vmatprep.subr.bf16.mxu0 %v3602_v15  ;;  %2168 = vmatprep.subr.bf16.mxu1 %v3605_v16 }
 0x176   :  { %1957 = vmatpush1.bf16.msra.mxu0 %v3600_v17  ;;  %2169 = vmatpush1.bf16.msra.mxu1 %v3603_v18 }
 0x177   :  { %1958 = vmatprep.subr.bf16.mxu0 %v3608_v19  ;;  %2170 = vmatprep.subr.bf16.mxu1 %v3611_v20 }
 0x17a   :  { %1959 = vmatpush1.bf16.msra.mxu0 %v3606_v21  ;;  %2171 = vmatpush1.bf16.msra.mxu1 %v3609_v22 }
 0x17b   :  { %1960 = vmatprep.subr.bf16.mxu0 %v3614_v23  ;;  %2172 = vmatprep.subr.bf16.mxu1 %v3617_v24 }
 0x17e   :  { %1961 = vmatpush1.bf16.msra.mxu0 %v3612_v26  ;;  %2173 = vmatpush1.bf16.msra.mxu1 %v3615_v28 }
 0x17f   :  { %3069 = vmatprep.subr.bf16.mxu0 %v3618_v31  ;;  %3097 = vmatprep.subr.bf16.mxu1 %v3619_v32 }
 0x181   :  { %1963 = vmatmul.mubr.bf16.vlgmr.msra.gmra.mrb[0].mxu0 %v2742_v33  ;;  %2175 = vmatmul.mubr.bf16.vlgmr.msra.gmra.mrb[0].mxu1 %v2742_v33 }
 0x182   :  { %1972 = vmatprep.mubr.bf16.mxu0 %v2751_v34  ;;  %2184 = vmatprep.mubr.bf16.mxu1 %v2751_v34 }
 0x183   :  { %3070 = vmatpush3.bf16.msra.mxu0 %v3620_v25  ;;  %3098 = vmatpush3.bf16.msra.mxu1 %v3621_v27  ;;  %v3857_v27 = vmov 0  }
 0x184   :  { %3071 = vmatprep.subr.bf16.mxu0 %v3622_v37  ;;  %3099 = vmatprep.subr.bf16.mxu1 %v3623_v38 }
 0x187   :  { %3072 = vmatpush3.bf16.msra.mxu0 %v3624_v39  ;;  %3100 = vmatpush3.bf16.msra.mxu1 %v3625_v40 }
 0x188   :  { %3073 = vmatprep.subr.bf16.mxu0 %v3626_v35  ;;  %3101 = vmatprep.subr.bf16.mxu1 %v3627_v36 }
 0x189   :  { %1973 = vmatmul.mubr.bf16.gmra.mrb[4].mxu0 %v2750_v41  ;;  %2185 = vmatmul.mubr.bf16.gmra.mrb[4].mxu1 %v2750_v41  ;;  %v3651_v41 = vld [vmem:[#allocation11 + $0x8] sm:$0xff]  }
 0x18b   :  { %3074 = vmatpush3.bf16.msra.mxu0 %v3628_v42  ;;  %3102 = vmatpush3.bf16.msra.mxu1 %v3629_v43 }
 0x18c   :  { %3075 = vmatprep.subr.bf16.mxu0 %v3630_v44  ;;  %3103 = vmatprep.subr.bf16.mxu1 %v3631_v45 }
 0x18f   :  { %3076 = vmatpush3.bf16.msra.mxu0 %v3632_v46  ;;  %3104 = vmatpush3.bf16.msra.mxu1 %v3633_v47 }
 0x190   :  { %3077 = vmatprep.subr.bf16.mxu0 %v3634_v48  ;;  %3105 = vmatprep.subr.bf16.mxu1 %v3635_v49 }
 0x193   :  { %3078 = vmatpush3.bf16.msra.mxu0 %v3636_v50  ;;  %3106 = vmatpush3.bf16.msra.mxu1 %v3637_v51 }
 0x194   :  { %3079 = vmatprep.subr.bf16.mxu0 %v3638_v52  ;;  %3107 = vmatprep.subr.bf16.mxu1 %v3639_v53 }
 0x197   :  { %3080 = vmatpush3.bf16.msra.mxu0 %v3640_v54  ;;  %3108 = vmatpush3.bf16.msra.mxu1 %v3641_v55 }
 0x198   :  { %3081 = vmatprep.subr.bf16.mxu0 %v3642_v56  ;;  %3109 = vmatprep.subr.bf16.mxu1 %v3643_v57  ;;  %v3652_v56 = vld [vmem:[#allocation11 + $0x10] sm:$0xff]  }
 0x19b   :  { %3082 = vmatpush3.bf16.msra.mxu0 %v3644_v58  ;;  %3110 = vmatpush3.bf16.msra.mxu1 %v3645_v59 }
 0x19c   :  { %3083 = vmatprep.subr.bf16.mxu0 %v3646_v60  ;;  %3111 = vmatprep.subr.bf16.mxu1 %v3647_v61 }
 0x19f   :  { %3084 = vmatpush3.bf16.msra.mxu0 %v3648_v62  ;;  %3112 = vmatpush3.bf16.msra.mxu1 %v3649_v63  ;;  %v3653_v63 = vld [vmem:[#allocation11 + $0x18] sm:$0xff]  }
 0x1a0   :  { %3135 = vmatprep.subr.bf16.mxu0 %v3650_v0 }
 0x254   :  { %v1964_v10 = vpop.f32.mrb[0].mxu0  ;;  %v2176_v11 = vpop.f32.mrb[0].mxu1 }
 0x255   :  { %v1966_v14 = vpop.f32.mrb[1].mxu0  ;;  %v2178_v15 = vpop.f32.mrb[1].mxu1  ;;  %v3155_v18 = vadd.f32 %v1964_v10, %v394_v8  ;;  %v3163_v19 = vadd.f32 %v2176_v11, %v402_v9 }
 0x256   :  { %v1968_v16 = vpop.f32.mrb[2].mxu0  ;;  %v2180_v17 = vpop.f32.mrb[2].mxu1  ;;  %v3156_v24 = vadd.f32 %v1966_v14, %v398_v12  ;;  %v3164_v26 = vadd.f32 %v2178_v15, %v406_v13 }
 0x257   :  { %v3157_v20 = vadd.f32 %v1968_v16, %v394_v8  ;;  %v3165_v21 = vadd.f32 %v2180_v17, %v402_v9  ;;  %v1970_v22 = vpop.f32.mrb[3].mxu0  ;;  %v2182_v23 = vpop.f32.mrb[3].mxu1 }
 0x258   :  { %v3158_v28 = vadd.f32 %v1970_v22, %v398_v12  ;;  %v3166_v29 = vadd.f32 %v2182_v23, %v406_v13 }
 0x259   :  { %v2195_v30 = vpack.c.bf16 %v3157_v20, %v3155_v18  ;;  %v2197_v31 = vpack.c.bf16 %v3165_v21, %v3163_v19 }
 0x25a   :  { %v2196_v32 = vpack.c.bf16 %v3158_v28, %v3156_v24  ;;  %v2198_v33 = vpack.c.bf16 %v3166_v29, %v3164_v26 }
 0x25b   :  { %v2203_v39 = vmax.bf16 %v3857_v27, %v2195_v30  ;;  %v2205_v40 = vmax.bf16 %v3857_v27, %v2197_v31 }
 0x25c   :  { %v1974_v34 = vpop.f32.mrb[4].mxu0  ;;  %v2186_v25 = vpop.f32.mrb[4].mxu1  ;;  %v2204_v37 = vmax.bf16 %v3857_v27, %v2196_v32  ;;  %v2206_v38 = vmax.bf16 %v3857_v27, %v2198_v33 }
 0x25d   :  { %v1976_v35 = vpop.f32.mrb[5].mxu0  ;;  %v2188_v36 = vpop.f32.mrb[5].mxu1  ;;  %v3159_v42 = vadd.f32 %v1974_v34, %v394_v8  ;;  %v3167_v45 = vadd.f32 %v2186_v25, %v402_v9 }
 0x25e   :  { %v1978_v43 = vpop.f32.mrb[6].mxu0  ;;  %v2190_v44 = vpop.f32.mrb[6].mxu1  ;;  %2506 = vmatprep.mubr.bf16.mxu0 %v2204_v37  ;;  %2555 = vmatprep.mubr.bf16.mxu1 %v2206_v38  ;;  %v3160_v50 = vadd.f32 %v1976_v35, %v398_v12  ;;  %v3168_v51 = vadd.f32 %v2188_v36, %v406_v13 }
 0x25f   :  { %v3161_v46 = vadd.f32 %v1978_v43, %v394_v8  ;;  %v3169_v47 = vadd.f32 %v2190_v44, %v402_v9  ;;  %v1980_v48 = vpop.f32.mrb[7].mxu0  ;;  %v2192_v49 = vpop.f32.mrb[7].mxu1  ;;  %2507 = vmatmul.mubr.bf16.vlgmr.msra.gmra.mrb[8].mxu0 %v2203_v39  ;;  %2556 = vmatmul.mubr.bf16.vlgmr.msra.gmra.mrb[8].mxu1 %v2205_v40  ;;  %v3041_v43 = vld [vmem:[#allocation13] ss:$0 sm:$0xff] }
 0x260   :  { %v3162_v52 = vadd.f32 %v1980_v48, %v398_v12  ;;  %v3170_v53 = vadd.f32 %v2192_v49, %v406_v13  ;;  %3136 = vmatpush3.bf16.msra.mxu0 %v3650_v0  ;;  %v3654_v0 = vld [vmem:[#allocation11 + $0x20] sm:$0xff]  }
 0x261   :  { %v2199_v54 = vpack.c.bf16 %v3161_v46, %v3159_v42  ;;  %v2201_v55 = vpack.c.bf16 %v3169_v47, %v3167_v45  ;;  %3137 = vmatprep.subr.bf16.mxu0 %v3651_v41 }
 0x262   :  { %v2200_v57 = vpack.c.bf16 %v3162_v52, %v3160_v50  ;;  %v2202_v58 = vpack.c.bf16 %v3170_v53, %v3168_v51 }
 0x263   :  { %v2207_v61 = vmax.bf16 %v3857_v27, %v2199_v54  ;;  %v2209_v62 = vmax.bf16 %v3857_v27, %v2201_v55 }
 0x264   :  { %v2208_v59 = vmax.bf16 %v3857_v27, %v2200_v57  ;;  %v2210_v60 = vmax.bf16 %v3857_v27, %v2202_v58  ;;  %3138 = vmatpush3.bf16.msra.mxu0 %v3651_v41 }
 0x265   :  { %3139 = vmatprep.subr.bf16.mxu0 %v3652_v56 }
 0x266   :  { %2514 = vmatprep.mubr.bf16.mxu0 %v2208_v59  ;;  %2563 = vmatprep.mubr.bf16.mxu1 %v2210_v60 }
 0x267   :  { %2515 = vmatmul.mubr.bf16.gmra.mrb[12].mxu0 %v2207_v61  ;;  %2564 = vmatmul.mubr.bf16.gmra.mrb[12].mxu1 %v2209_v62 }
 0x268   :  { %3140 = vmatpush3.bf16.msra.mxu0 %v3652_v56 }
 0x269   :  { %3141 = vmatprep.subr.bf16.mxu0 %v3653_v63 }
 0x26c   :  { %3142 = vmatpush3.bf16.msra.mxu0 %v3653_v63 }
 0x26d   :  { %3143 = vmatprep.subr.bf16.mxu0 %v3654_v0 }
 0x270   :  { %3144 = vmatpush3.bf16.msra.mxu0 %v3654_v0 }
 0x271   :  { %3145 = vmatprep.subr.bf16.mxu0 %v3655_v1 }
 0x274   :  { %3146 = vmatpush3.bf16.msra.mxu0 %v3655_v1 }
 0x275   :  { %3147 = vmatprep.subr.bf16.mxu0 %v3656_v2 }
 0x278   :  { %3148 = vmatpush3.bf16.msra.mxu0 %v3656_v2 }
 0x279   :  { %3149 = vmatprep.subr.bf16.mxu0 %v3657_v3 }
 0x27c   :  { %3150 = vmatpush3.bf16.msra.mxu0 %v3657_v3 }
 0x332   :  { %v3085_v4 = vpop.f32.mrb[8].mxu0  ;;  %v3113_v5 = vpop.f32.mrb[8].mxu1 }
 0x333   :  { %v3086_v7 = vpop.f32.mrb[9].mxu0  ;;  %v3114_v8 = vpop.f32.mrb[9].mxu1 }
 0x334   :  { %v3087_v9 = vadd.f32 %v3086_v7, %v3085_v4  ;;  %v3115_v10 = vadd.f32 %v3114_v8, %v3113_v5  ;;  %v3088_v11 = vpop.f32.mrb[10].mxu0  ;;  %v3116_v12 = vpop.f32.mrb[10].mxu1 }
 0x335   :  { %v3089_v13 = vpop.f32.mrb[11].mxu0  ;;  %v3117_v14 = vpop.f32.mrb[11].mxu1 }
 0x336   :  { %v2509_v15 = vadd.f32 %v3087_v9, %v3008_v6  ;;  %v3090_v16 = vadd.f32 %v3089_v13, %v3088_v11  ;;  %v3118_v17 = vadd.f32 %v3117_v14, %v3116_v12 }
 0x338   :  { %v2558_v18 = vadd.f32 %v3115_v10, %v2509_v15  ;;  %v2512_v19 = vadd.f32 %v3090_v16, %v3008_v6 }
 0x33a   :  { %v2561_v20 = vadd.f32 %v3118_v17, %v2512_v19  ;;  %v3091_v21 = vpop.f32.mrb[12].mxu0  ;;  %v3119_v22 = vpop.f32.mrb[12].mxu1 }
 0x33b   :  { %v3092_v23 = vpop.f32.mrb[13].mxu0  ;;  %v3120_v24 = vpop.f32.mrb[13].mxu1 }
 0x33c   :  { %v2572_v26 = vpack.c.bf16 %v2561_v20, %v2558_v18  ;;  %v3093_v28 = vadd.f32 %v3092_v23, %v3091_v21  ;;  %v3121_v29 = vadd.f32 %v3120_v24, %v3119_v22  ;;  %v3094_v30 = vpop.f32.mrb[14].mxu0  ;;  %v3122_v31 = vpop.f32.mrb[14].mxu1 }
 0x33d   :  { %v3095_v32 = vpop.f32.mrb[15].mxu0  ;;  %v3123_v33 = vpop.f32.mrb[15].mxu1 }
 0x33e   :  { %v2517_v34 = vadd.f32 %v3093_v28, %v3008_v6  ;;  %v3096_v25 = vadd.f32 %v3095_v32, %v3094_v30  ;;  %v3124_v37 = vadd.f32 %v3123_v33, %v3122_v31  ;;  %v2574_v38 = vmax.bf16 %v3857_v27, %v2572_v26 }
 0x340   :  { %v2566_v39 = vadd.f32 %v3121_v29, %v2517_v34  ;;  %v2520_v40 = vadd.f32 %v3096_v25, %v3008_v6  ;;  %3151 = vmatprep.mubr.bf16.mxu0 %v2574_v38 }
 0x342   :  { %v2569_v35 = vadd.f32 %v3124_v37, %v2520_v40 }
 0x344   :  { %v2573_v36 = vpack.c.bf16 %v2569_v35, %v2566_v39 }
 0x346   :  { %v2575_v41 = vmax.bf16 %v3857_v27, %v2573_v36 }
 0x348   :  { %3152 = vmatmul.mubr.bf16.vlgmr.msra.gmra.mrb[16].mxu0 %v2575_v41 }
 0x41b   :  { %v3153_v42 = vpop.f32.mrb[16].mxu0 }
 0x41c   :  { %v2681_v44 = vpop.f32.mrb[17].mxu0  ;;  %v2690_v46 = vadd.f32 %v3153_v42, %v3041_v43 }
 0x41d   :  { %v3154_v45 = vpop.f32.mrb[18].mxu0  ;;  %v2682_v49 = vadd.f32 %v3041_v43, %v2681_v44 }
 0x41e   :  { %v2693_v47 = vadd.f32 %v3154_v45, %v3041_v43  ;;  %v2684_v48 = vpop.f32.mrb[19].mxu0 }
 0x41f   :  { %v2685_v50 = vadd.f32 %v3041_v43, %v2684_v48 }
 0x420   :  { %v3066_v51 = vpack.c.bf16 %v2693_v47, %v2690_v46 }
 0x421   :  { %v3061_v52 = vpack.c.bf16 %v2685_v50, %v2682_v49 }
 0x422   :  { %3068 = vst [vmem:[#allocation14 + $0x8] sm:$0xff] %v3066_v51  }
 0x423   :  { %3062 = vst [vmem:[#allocation14] sm:$0xff] %v3061_v52  }
 0x424   :  { %3823 = shalt.err (!%p3820_p4)
}
 0x425   :  { %s3824_s20 = scalar_lea.hbm %s4052_s7, 256 }
 0x426   :  { %p3825_p5 = scmp.ne.s32.totalorder %s4052_s7, %s3824_s20  ;;  %p3828_p6 = scmp.lt.u32.totalorder %s3824_s20, %s4052_s7 }
 0x428   :  { %p3830_p7 = pnand %p3828_p6, %p3825_p5 }
 0x42a   :  { %3833 = shalt.err (!%p3830_p7)
}
 0x42b   :  { %2727 = dma.vmem_to_hbm [thread:$0]  %s2722_s0, 256, %s4052_s7, [#allocation4], %s3848_s1, %s3848_s1, %s3849_s25  }
 0x42c   :  { %3842 = dma.done.wait [#allocation4], 256  }
 0x42d   :  { %3843 = vsyncadd [#allocation4], 4294967040 }
 0x42e   :  { %2731 = vsyncpa [#allocation3], 1 }
 0x42f   :  { %2732 = vsyncpa [#allocation6], 1 }
 0x430   :  { %2733 = vsyncpa [#allocation9], 1 }
 0x431   :  { %2734 = vsyncpa [#allocation12], 1 }
 0x432   :  { %2735 = vsyncpa [#allocation4], 1 }

</bundles_post_ra>
